<compile_context>
chip_gen: v5e
topology: v5e:2x2
jax: 0.10.0
libtpu: 0.0.40
codegen_flags: <defaults>
</compile_context>

<pallas_src>
import functools

import jax
import jax.numpy as jnp
from jax import lax
from jax.scipy.linalg import block_diag
from jax.experimental import pallas as pl
from jax.experimental.pallas import tpu as pltpu


def _relu6(x):
    return jnp.minimum(jnp.maximum(x, 0.0), 6.0)


# ---------------------------------------------------------------------------
# Fully fused MBConv kernel: one grid step == Nb images, lane-dense layout.
# ---------------------------------------------------------------------------
def _mbconv_kernel(x_ref, w_exp_ref, b_exp_ref, w_dw_ref, b_dw_ref,
                   pool_ref, w_se1_ref, b_se1_ref, w_se2_ref, b_se2_ref,
                   bcast_ref, w_pw_ref, b_pw_ref, o_ref, *,
                   H, W, hidden, use_shortcut):
    Nb = x_ref.shape[0]
    Lin = x_ref.shape[2]            # W * Cin
    Lh = W * hidden
    NbH = Nb * H

    # x arrives lane-dense (Nb, H, W*Cin).  Merging the leading dims keeps the
    # minor (8,128) tiling intact (H is a multiple of 8) -> cheap.
    x = x_ref[...].astype(jnp.float32).reshape(NbH, Lin)

    # ---- EXPANSION: block-diagonal 1x1 conv (MXU), result born lane-dense ----
    h = jnp.dot(x, w_exp_ref[...], preferred_element_type=jnp.float32)
    h = _relu6(h + b_exp_ref[...])                      # (NbH, W*hidden)

    # ---- CONV2D: 3x3 depthwise, stride 1, pad 1 via XLU rolls + masks ----
    # W-direction (kx) halo is handled by pre-zeroed lanes in the wide weights;
    # H-direction (ky) halo is handled by zeroing the wrapped rows here.
    w_dw = w_dw_ref[...]                                # (9, W*hidden)
    row = lax.broadcasted_iota(jnp.int32, (NbH, Lh), 0)
    if Nb > 1:
        row = lax.rem(row, H)                           # row index within each image
    zero = jnp.zeros_like(h)
    h_up = jnp.where(row != 0, pltpu.roll(h, 1, 0), zero)            # in[h-1]
    h_dn = jnp.where(row != H - 1, pltpu.roll(h, NbH - 1, 0), zero)  # in[h+1]

    acc = jnp.zeros((NbH, Lh), jnp.float32)
    for ky, r in enumerate((h_up, h, h_dn)):
        r_l = pltpu.roll(r, hidden, 1)                  # in[.., w-1, :]
        r_r = pltpu.roll(r, Lh - hidden, 1)             # in[.., w+1, :]
        k = 3 * ky
        acc = acc + r_l * w_dw[k + 0:k + 1]
        acc = acc + r * w_dw[k + 1:k + 2]
        acc = acc + r_r * w_dw[k + 2:k + 3]
    dw = _relu6(acc + b_dw_ref[...])                    # (NbH, W*hidden)

    # ---- SE: per-image avg-pool -> FC -> ReLU -> FC -> sigmoid -> scale ----
    if Nb == 1:
        rs = jnp.sum(dw, axis=0, keepdims=True)         # (1, W*hidden)
    else:
        rs = jnp.sum(dw.reshape(Nb, H, Lh), axis=1)     # (Nb, W*hidden)
    pooled = jnp.dot(rs, pool_ref[...],
                     preferred_element_type=jnp.float32) * (1.0 / float(H * W))
    s = jnp.dot(pooled, w_se1_ref[...], preferred_element_type=jnp.float32) + b_se1_ref[...]
    s = jnp.maximum(s, 0.0)
    s = jnp.dot(s, w_se2_ref[...], preferred_element_type=jnp.float32) + b_se2_ref[...]
    gate = jax.nn.sigmoid(s)                            # (Nb, hidden)
    gate_wide = jnp.dot(gate, bcast_ref[...], preferred_element_type=jnp.float32)
    if Nb == 1:
        scaled = dw * gate_wide
    else:
        scaled = (dw.reshape(Nb, H, Lh) * gate_wide[:, None, :]).reshape(NbH, Lh)

    # ---- PWCONV2D: block-diagonal 1x1 projection + bias [+ fused residual] ----
    y = jnp.dot(scaled, w_pw_ref[...], preferred_element_type=jnp.float32) + b_pw_ref[...]
    if use_shortcut:
        y = y + x
    o_ref[...] = y.reshape(Nb, H, o_ref.shape[2]).astype(o_ref.dtype)


# ---------------------------------------------------------------------------
# Parameter packing: lane-dense / block-diagonal weights (done once per W).
# ---------------------------------------------------------------------------
def _pack_params(raw, W):
    f32 = jnp.float32
    _, hidden = raw["w_exp"].shape
    Lh = W * hidden

    w_exp_bd = block_diag(*([raw["w_exp"].astype(f32)] * W))   # (W*Cin, W*hidden)
    w_pw_bd = block_diag(*([raw["w_pw"].astype(f32)] * W))     # (W*hidden, W*Cout)

    # depthwise taps, widened to the lane-dense layout; zero the lane groups
    # that would read outside the image in the W direction (kx edges).
    w_dw_wide = jnp.tile(raw["w_dw"].reshape(9, hidden).astype(f32), (1, W))
    lane = jnp.arange(Lh)
    left_valid = (lane >= hidden).astype(f32)                  # kx=0 reads w-1
    right_valid = (lane < (W - 1) * hidden).astype(f32)        # kx=2 reads w+1
    kx = jnp.arange(9) % 3
    col_scale = jnp.where(kx[:, None] == 0, left_valid[None, :],
                          jnp.where(kx[:, None] == 2, right_valid[None, :], 1.0))
    w_dw_wide = w_dw_wide * col_scale

    pool_mat = jnp.tile(jnp.eye(hidden, dtype=f32), (W, 1))    # (W*hidden, hidden)
    bcast_mat = pool_mat.T                                     # (hidden, W*hidden)

    return {
        "w_exp_bd": w_exp_bd,
        "b_exp_wide": jnp.tile(raw["b_exp"].astype(f32), W)[None, :],
        "w_dw_wide": w_dw_wide,
        "b_dw_wide": jnp.tile(raw["b_dw"].astype(f32), W)[None, :],
        "pool_mat": pool_mat,
        "w_se1": raw["w_se1"].astype(f32),
        "b_se1": raw["b_se1"].astype(f32)[None, :],
        "w_se2": raw["w_se2"].astype(f32),
        "b_se2": raw["b_se2"].astype(f32)[None, :],
        "bcast_mat": bcast_mat,
        "w_pw_bd": w_pw_bd,
        "b_pw_wide": jnp.tile(raw["b_pw"].astype(f32), W)[None, :],
    }


def _pick_images_per_step(N, per_image_bytes, budget_bytes=4 << 20):
    # Keep grid length >= 2 when possible (v7x megacore) while amortizing the
    # ~0.35us per-grid-step overhead for larger batches.
    if N <= 2:
        return 1
    best = 1
    for nb in range(1, N // 2 + 1):
        if N % nb == 0 and nb * per_image_bytes <= budget_bytes:
            best = nb
    return best


def _mbconv_forward(packed, x_nchw, *, use_shortcut):
    N, Cin, H, W = x_nchw.shape
    hidden = packed["w_dw_wide"].shape[1] // W
    Cout = packed["b_pw_wide"].shape[1] // W
    Lin, Lh, Lout = W * Cin, W * hidden, W * Cout

    # NCHW -> lane-dense (N, H, W*Cin); fuses with surrounding XLA ops under jit.
    x = jnp.transpose(x_nchw, (0, 2, 3, 1)).reshape(N, H, Lin)

    per_img = H * Lh * 4 * 6                  # rough live-activation footprint
    Nb = _pick_images_per_step(N, per_img)
    grid = (N // Nb,)

    def const_spec(shape):
        nd = len(shape)
        return pl.BlockSpec(shape, lambda n, _nd=nd: (0,) * _nd)

    kernel = functools.partial(_mbconv_kernel, H=H, W=W, hidden=hidden,
                               use_shortcut=use_shortcut)

    out = pl.pallas_call(
        kernel,
        out_shape=jax.ShapeDtypeStruct((N, H, Lout), x.dtype),
        grid=grid,
        in_specs=[
            pl.BlockSpec((Nb, H, Lin), lambda n: (n, 0, 0)),
            const_spec((Lin, Lh)), const_spec((1, Lh)),        # expansion (block-diag)
            const_spec((9, Lh)), const_spec((1, Lh)),          # depthwise (wide, edge-masked)
            const_spec((Lh, hidden)),                          # SE pooling matrix
            const_spec(packed["w_se1"].shape), const_spec(packed["b_se1"].shape),
            const_spec(packed["w_se2"].shape), const_spec(packed["b_se2"].shape),
            const_spec((hidden, Lh)),                          # SE broadcast matrix
            const_spec((Lh, Lout)), const_spec((1, Lout)),     # pwconv (block-diag)
        ],
        out_specs=pl.BlockSpec((Nb, H, Lout), lambda n: (n, 0, 0)),
        compiler_params=pltpu.CompilerParams(
            dimension_semantics=("parallel",)),
    )(
        x,
        packed["w_exp_bd"], packed["b_exp_wide"],
        packed["w_dw_wide"], packed["b_dw_wide"],
        packed["pool_mat"],
        packed["w_se1"], packed["b_se1"],
        packed["w_se2"], packed["b_se2"],
        packed["bcast_mat"],
        packed["w_pw_bd"], packed["b_pw_wide"],
    )
    return jnp.transpose(out.reshape(N, H, W, Cout), (0, 3, 1, 2))   # -> NCHW


# ---------------------------------------------------------------------------
# Pure-jnp reference (NHWC math, NCHW interface) used for self-checking.
# ---------------------------------------------------------------------------
def _reference_forward(raw, x_nchw, use_shortcut):
    x = jnp.transpose(x_nchw, (0, 2, 3, 1)).astype(jnp.float32)
    _, H, W, _ = x.shape
    h = jnp.einsum("nhwc,cd->nhwd", x, raw["w_exp"]) + raw["b_exp"]
    h = jnp.clip(h, 0.0, 6.0)
    hp = jnp.pad(h, ((0, 0), (1, 1), (1, 1), (0, 0)))
    acc = jnp.zeros_like(h)
    for ky in range(3):
        for kx in range(3):
            acc = acc + hp[:, ky:ky + H, kx:kx + W, :] * raw["w_dw"][ky, kx]
    d = jnp.clip(acc + raw["b_dw"], 0.0, 6.0)
    pooled = jnp.mean(d, axis=(1, 2))
    s = jnp.maximum(pooled @ raw["w_se1"] + raw["b_se1"], 0.0)
    s = jax.nn.sigmoid(s @ raw["w_se2"] + raw["b_se2"])
    d = d * s[:, None, None, :]
    y = jnp.einsum("nhwc,cd->nhwd", d, raw["w_pw"]) + raw["b_pw"]
    if use_shortcut:
        y = y + x
    return jnp.transpose(y, (0, 3, 1, 2))


# ---------------------------------------------------------------------------
# The module (concrete instantiation of BaseModule)
# ---------------------------------------------------------------------------
class BaseModulePallas:
    def __init__(self, in_channels, out_channels, expansion_ratio, se_ratio,
                 shortcut, stride=1, key=None):
        assert stride == 1 or stride == (1, 1)  # TODO(synk): strided depthwise not implemented
        self.use_shortcut = (in_channels == out_channels) and shortcut
        self.in_channels = in_channels
        self.out_channels = out_channels
        hidden = in_channels * expansion_ratio
        se_ch = max(1, int(hidden * se_ratio))
        self.hidden = hidden

        key = jax.random.PRNGKey(0) if key is None else key
        ks = jax.random.split(key, 8)
        f32 = jnp.float32
        # deterministic synthetic weights
        self.params = {
            "w_exp": jax.random.normal(ks[0], (in_channels, hidden), f32) * 0.2,
            "b_exp": jax.random.normal(ks[1], (hidden,), f32) * 0.05,
            "w_dw": jax.random.normal(ks[2], (3, 3, hidden), f32) * 0.2,
            "b_dw": jax.random.normal(ks[3], (hidden,), f32) * 0.05,
            "w_se1": jax.random.normal(ks[4], (hidden, se_ch), f32) * 0.2,
            "b_se1": jnp.zeros((se_ch,), f32),
            "w_se2": jax.random.normal(ks[5], (se_ch, hidden), f32) * 0.2,
            "b_se2": jnp.zeros((hidden,), f32),
            "w_pw": jax.random.normal(ks[6], (hidden, out_channels), f32) * 0.2,
            "b_pw": jax.random.normal(ks[7], (out_channels,), f32) * 0.05,
        }
        self._packed = None
        self._packed_W = None
        self._fwd = jax.jit(
            functools.partial(_mbconv_forward, use_shortcut=self.use_shortcut))

    def __call__(self, x_nchw):
        W = x_nchw.shape[3]
        if self._packed is None or self._packed_W != W:
            self._packed = _pack_params(self.params, W)   # packed once per spatial width
            self._packed_W = W
        return self._fwd(self._packed, x_nchw)


if __name__ == "__main__":
    key = jax.random.PRNGKey(0)
    k_x, k_p = jax.random.split(key)

    N, C, H, W = 2, 8, 16, 16
    x = jax.random.normal(k_x, (N, C, H, W), jnp.float32)

    block = BaseModulePallas(
        in_channels=C, out_channels=C, expansion_ratio=4,
        se_ratio=0.25, shortcut=True, stride=1, key=k_p,
    )

    y = jax.block_until_ready(block(x))
    assert y.shape == (N, C, H, W), y.shape
    assert bool(jnp.all(jnp.isfinite(y)))

    y_ref = jax.block_until_ready(
        _reference_forward(block.params, x, block.use_shortcut))
    max_err = float(jnp.max(jnp.abs(y - y_ref)))
    assert bool(jnp.allclose(y, y_ref, rtol=1e-3, atol=1e-3)), max_err

    print("KERNEL_OK")
</pallas_src>

<mosaic_0001>
module attributes {stable_mosaic.version = 11 : i64} {
  func.func @_mbconv_kernel(%arg0: i32, %arg1: memref<1x16x128xf32, #tpu.memory_space<vmem>>, %arg2: memref<128x512xf32, #tpu.memory_space<vmem>>, %arg3: memref<1x512xf32, #tpu.memory_space<vmem>>, %arg4: memref<9x512xf32, #tpu.memory_space<vmem>>, %arg5: memref<1x512xf32, #tpu.memory_space<vmem>>, %arg6: memref<512x32xf32, #tpu.memory_space<vmem>>, %arg7: memref<32x8xf32, #tpu.memory_space<vmem>>, %arg8: memref<1x8xf32, #tpu.memory_space<vmem>>, %arg9: memref<8x32xf32, #tpu.memory_space<vmem>>, %arg10: memref<1x32xf32, #tpu.memory_space<vmem>>, %arg11: memref<32x512xf32, #tpu.memory_space<vmem>>, %arg12: memref<512x128xf32, #tpu.memory_space<vmem>>, %arg13: memref<1x128xf32, #tpu.memory_space<vmem>>, %arg14: memref<1x16x128xf32, #tpu.memory_space<vmem>>) attributes {dimension_semantics = [#tpu.dimension_semantics<parallel>], iteration_bounds = array<i64: 2>, scalar_prefetch = 0 : i64, scratch_operands = 0 : i64, tpu.core_type = #tpu.core_type<tc>, window_params = [{transform_indices = @transform_0, window_bounds = array<i64: 1, 16, 128>}, {pipeline_mode = #tpu.pipeline_mode<synchronous>, transform_indices = @transform_1, window_bounds = array<i64: 128, 512>}, {pipeline_mode = #tpu.pipeline_mode<synchronous>, transform_indices = @transform_2, window_bounds = array<i64: 1, 512>}, {pipeline_mode = #tpu.pipeline_mode<synchronous>, transform_indices = @transform_3, window_bounds = array<i64: 9, 512>}, {pipeline_mode = #tpu.pipeline_mode<synchronous>, transform_indices = @transform_4, window_bounds = array<i64: 1, 512>}, {pipeline_mode = #tpu.pipeline_mode<synchronous>, transform_indices = @transform_5, window_bounds = array<i64: 512, 32>}, {pipeline_mode = #tpu.pipeline_mode<synchronous>, transform_indices = @transform_6, window_bounds = array<i64: 32, 8>}, {pipeline_mode = #tpu.pipeline_mode<synchronous>, transform_indices = @transform_7, window_bounds = array<i64: 1, 8>}, {pipeline_mode = #tpu.pipeline_mode<synchronous>, transform_indices = @transform_8, window_bounds = array<i64: 8, 32>}, {pipeline_mode = #tpu.pipeline_mode<synchronous>, transform_indices = @transform_9, window_bounds = array<i64: 1, 32>}, {pipeline_mode = #tpu.pipeline_mode<synchronous>, transform_indices = @transform_10, window_bounds = array<i64: 32, 512>}, {pipeline_mode = #tpu.pipeline_mode<synchronous>, transform_indices = @transform_11, window_bounds = array<i64: 512, 128>}, {pipeline_mode = #tpu.pipeline_mode<synchronous>, transform_indices = @transform_12, window_bounds = array<i64: 1, 128>}, {transform_indices = @transform_13, window_bounds = array<i64: 1, 16, 128>}]} {
    %c0 = arith.constant 0 : index
    %c0_0 = arith.constant 0 : index
    %c0_1 = arith.constant 0 : index
    %0 = vector.load %arg1[%c0, %c0_0, %c0_1] : memref<1x16x128xf32, #tpu.memory_space<vmem>>, vector<1x16x128xf32>
    %1 = vector.shape_cast %0 : vector<1x16x128xf32> to vector<16x128xf32>
    %c0_2 = arith.constant 0 : index
    %c0_3 = arith.constant 0 : index
    %2 = vector.load %arg2[%c0_2, %c0_3] : memref<128x512xf32, #tpu.memory_space<vmem>>, vector<128x512xf32>
    %cst = arith.constant dense<0.000000e+00> : vector<16x512xf32>
    %3 = tpu.matmul %1, %2, %cst {dimension_numbers = #tpu.dot_dimension_numbers<[1], [0], [0], [1], [0, 0, 1, 1], [], []>} : vector<16x128xf32>, vector<128x512xf32>, vector<16x512xf32> -> vector<16x512xf32>
    %c0_4 = arith.constant 0 : index
    %c0_5 = arith.constant 0 : index
    %4 = vector.load %arg3[%c0_4, %c0_5] : memref<1x512xf32, #tpu.memory_space<vmem>>, vector<1x512xf32>
    %5 = vector.broadcast %4 : vector<1x512xf32> to vector<16x512xf32>
    %6 = arith.addf %3, %5 : vector<16x512xf32>
    %cst_6 = arith.constant 0.000000e+00 : f32
    %7 = vector.broadcast %cst_6 : f32 to vector<16x512xf32>
    %8 = arith.maximumf %6, %7 : vector<16x512xf32>
    %cst_7 = arith.constant 6.000000e+00 : f32
    %9 = vector.broadcast %cst_7 : f32 to vector<16x512xf32>
    %10 = arith.minimumf %8, %9 : vector<16x512xf32>
    %c0_8 = arith.constant 0 : index
    %c0_9 = arith.constant 0 : index
    %11 = vector.load %arg4[%c0_8, %c0_9] : memref<9x512xf32, #tpu.memory_space<vmem>>, vector<9x512xf32>
    %12 = tpu.iota {dimensions = array<i32: 0>} : vector<16x512xi32>
    %cst_10 = arith.constant 0.000000e+00 : f32
    %13 = vector.broadcast %cst_10 : f32 to vector<16x512xf32>
    %c0_i32 = arith.constant 0 : i32
    %14 = vector.broadcast %c0_i32 : i32 to vector<16x512xi32>
    %15 = arith.cmpi ne, %12, %14 : vector<16x512xi32>
    %c1_i32 = arith.constant 1 : i32
    %16 = tpu.dynamic_rotate %10 by %c1_i32 dim 0 : vector<16x512xf32>, i32 -> vector<16x512xf32>
    %17 = arith.select %15, %16, %13 : vector<16x512xi1>, vector<16x512xf32>
    %c15_i32 = arith.constant 15 : i32
    %18 = vector.broadcast %c15_i32 : i32 to vector<16x512xi32>
    %19 = arith.cmpi ne, %12, %18 : vector<16x512xi32>
    %c15_i32_11 = arith.constant 15 : i32
    %20 = tpu.dynamic_rotate %10 by %c15_i32_11 dim 0 : vector<16x512xf32>, i32 -> vector<16x512xf32>
    %21 = arith.select %19, %20, %13 : vector<16x512xi1>, vector<16x512xf32>
    %cst_12 = arith.constant 0.000000e+00 : f32
    %22 = vector.broadcast %cst_12 : f32 to vector<16x512xf32>
    %c32_i32 = arith.constant 32 : i32
    %23 = tpu.dynamic_rotate %17 by %c32_i32 dim 1 : vector<16x512xf32>, i32 -> vector<16x512xf32>
    %c480_i32 = arith.constant 480 : i32
    %24 = tpu.dynamic_rotate %17 by %c480_i32 dim 1 : vector<16x512xf32>, i32 -> vector<16x512xf32>
    %25 = vector.extract_strided_slice %11 {offsets = [0, 0], sizes = [1, 512], strides = [1, 1]} : vector<9x512xf32> to vector<1x512xf32>
    %26 = vector.broadcast %25 : vector<1x512xf32> to vector<16x512xf32>
    %27 = arith.mulf %23, %26 : vector<16x512xf32>
    %28 = arith.addf %22, %27 : vector<16x512xf32>
    %29 = vector.extract_strided_slice %11 {offsets = [1, 0], sizes = [1, 512], strides = [1, 1]} : vector<9x512xf32> to vector<1x512xf32>
    %30 = vector.broadcast %29 : vector<1x512xf32> to vector<16x512xf32>
    %31 = arith.mulf %17, %30 : vector<16x512xf32>
    %32 = arith.addf %28, %31 : vector<16x512xf32>
    %33 = vector.extract_strided_slice %11 {offsets = [2, 0], sizes = [1, 512], strides = [1, 1]} : vector<9x512xf32> to vector<1x512xf32>
    %34 = vector.broadcast %33 : vector<1x512xf32> to vector<16x512xf32>
    %35 = arith.mulf %24, %34 : vector<16x512xf32>
    %36 = arith.addf %32, %35 : vector<16x512xf32>
    %c32_i32_13 = arith.constant 32 : i32
    %37 = tpu.dynamic_rotate %10 by %c32_i32_13 dim 1 : vector<16x512xf32>, i32 -> vector<16x512xf32>
    %c480_i32_14 = arith.constant 480 : i32
    %38 = tpu.dynamic_rotate %10 by %c480_i32_14 dim 1 : vector<16x512xf32>, i32 -> vector<16x512xf32>
    %39 = vector.extract_strided_slice %11 {offsets = [3, 0], sizes = [1, 512], strides = [1, 1]} : vector<9x512xf32> to vector<1x512xf32>
    %40 = vector.broadcast %39 : vector<1x512xf32> to vector<16x512xf32>
    %41 = arith.mulf %37, %40 : vector<16x512xf32>
    %42 = arith.addf %36, %41 : vector<16x512xf32>
    %43 = vector.extract_strided_slice %11 {offsets = [4, 0], sizes = [1, 512], strides = [1, 1]} : vector<9x512xf32> to vector<1x512xf32>
    %44 = vector.broadcast %43 : vector<1x512xf32> to vector<16x512xf32>
    %45 = arith.mulf %10, %44 : vector<16x512xf32>
    %46 = arith.addf %42, %45 : vector<16x512xf32>
    %47 = vector.extract_strided_slice %11 {offsets = [5, 0], sizes = [1, 512], strides = [1, 1]} : vector<9x512xf32> to vector<1x512xf32>
    %48 = vector.broadcast %47 : vector<1x512xf32> to vector<16x512xf32>
    %49 = arith.mulf %38, %48 : vector<16x512xf32>
    %50 = arith.addf %46, %49 : vector<16x512xf32>
    %c32_i32_15 = arith.constant 32 : i32
    %51 = tpu.dynamic_rotate %21 by %c32_i32_15 dim 1 : vector<16x512xf32>, i32 -> vector<16x512xf32>
    %c480_i32_16 = arith.constant 480 : i32
    %52 = tpu.dynamic_rotate %21 by %c480_i32_16 dim 1 : vector<16x512xf32>, i32 -> vector<16x512xf32>
    %53 = vector.extract_strided_slice %11 {offsets = [6, 0], sizes = [1, 512], strides = [1, 1]} : vector<9x512xf32> to vector<1x512xf32>
    %54 = vector.broadcast %53 : vector<1x512xf32> to vector<16x512xf32>
    %55 = arith.mulf %51, %54 : vector<16x512xf32>
    %56 = arith.addf %50, %55 : vector<16x512xf32>
    %57 = vector.extract_strided_slice %11 {offsets = [7, 0], sizes = [1, 512], strides = [1, 1]} : vector<9x512xf32> to vector<1x512xf32>
    %58 = vector.broadcast %57 : vector<1x512xf32> to vector<16x512xf32>
    %59 = arith.mulf %21, %58 : vector<16x512xf32>
    %60 = arith.addf %56, %59 : vector<16x512xf32>
    %61 = vector.extract_strided_slice %11 {offsets = [8, 0], sizes = [1, 512], strides = [1, 1]} : vector<9x512xf32> to vector<1x512xf32>
    %62 = vector.broadcast %61 : vector<1x512xf32> to vector<16x512xf32>
    %63 = arith.mulf %52, %62 : vector<16x512xf32>
    %64 = arith.addf %60, %63 : vector<16x512xf32>
    %c0_17 = arith.constant 0 : index
    %c0_18 = arith.constant 0 : index
    %65 = vector.load %arg5[%c0_17, %c0_18] : memref<1x512xf32, #tpu.memory_space<vmem>>, vector<1x512xf32>
    %66 = vector.broadcast %65 : vector<1x512xf32> to vector<16x512xf32>
    %67 = arith.addf %64, %66 : vector<16x512xf32>
    %cst_19 = arith.constant 0.000000e+00 : f32
    %68 = vector.broadcast %cst_19 : f32 to vector<16x512xf32>
    %69 = arith.maximumf %67, %68 : vector<16x512xf32>
    %cst_20 = arith.constant 6.000000e+00 : f32
    %70 = vector.broadcast %cst_20 : f32 to vector<16x512xf32>
    %71 = arith.minimumf %69, %70 : vector<16x512xf32>
    %cst_21 = arith.constant dense<0.000000e+00> : vector<512xf32>
    %72 = vector.multi_reduction <add>, %71, %cst_21 [0] : vector<16x512xf32> to vector<512xf32>
    %73 = vector.shape_cast %72 : vector<512xf32> to vector<1x512xf32>
    %c0_22 = arith.constant 0 : index
    %c0_23 = arith.constant 0 : index
    %74 = vector.load %arg6[%c0_22, %c0_23] : memref<512x32xf32, #tpu.memory_space<vmem>>, vector<512x32xf32>
    %cst_24 = arith.constant dense<0.000000e+00> : vector<1x32xf32>
    %75 = tpu.matmul %73, %74, %cst_24 {dimension_numbers = #tpu.dot_dimension_numbers<[1], [0], [0], [1], [0, 0, 1, 1], [], []>} : vector<1x512xf32>, vector<512x32xf32>, vector<1x32xf32> -> vector<1x32xf32>
    %cst_25 = arith.constant 3.906250e-03 : f32
    %76 = vector.broadcast %cst_25 : f32 to vector<1x32xf32>
    %77 = arith.mulf %75, %76 : vector<1x32xf32>
    %c0_26 = arith.constant 0 : index
    %c0_27 = arith.constant 0 : index
    %78 = vector.load %arg7[%c0_26, %c0_27] : memref<32x8xf32, #tpu.memory_space<vmem>>, vector<32x8xf32>
    %cst_28 = arith.constant dense<0.000000e+00> : vector<1x8xf32>
    %79 = tpu.matmul %77, %78, %cst_28 {dimension_numbers = #tpu.dot_dimension_numbers<[1], [0], [0], [1], [0, 0, 1, 1], [], []>} : vector<1x32xf32>, vector<32x8xf32>, vector<1x8xf32> -> vector<1x8xf32>
    %c0_29 = arith.constant 0 : index
    %c0_30 = arith.constant 0 : index
    %80 = vector.load %arg8[%c0_29, %c0_30] : memref<1x8xf32, #tpu.memory_space<vmem>>, vector<1x8xf32>
    %81 = arith.addf %79, %80 : vector<1x8xf32>
    %cst_31 = arith.constant 0.000000e+00 : f32
    %82 = vector.broadcast %cst_31 : f32 to vector<1x8xf32>
    %83 = arith.maximumf %81, %82 : vector<1x8xf32>
    %c0_32 = arith.constant 0 : index
    %c0_33 = arith.constant 0 : index
    %84 = vector.load %arg9[%c0_32, %c0_33] : memref<8x32xf32, #tpu.memory_space<vmem>>, vector<8x32xf32>
    %cst_34 = arith.constant dense<0.000000e+00> : vector<1x32xf32>
    %85 = tpu.matmul %83, %84, %cst_34 {dimension_numbers = #tpu.dot_dimension_numbers<[1], [0], [0], [1], [0, 0, 1, 1], [], []>} : vector<1x8xf32>, vector<8x32xf32>, vector<1x32xf32> -> vector<1x32xf32>
    %c0_35 = arith.constant 0 : index
    %c0_36 = arith.constant 0 : index
    %86 = vector.load %arg10[%c0_35, %c0_36] : memref<1x32xf32, #tpu.memory_space<vmem>>, vector<1x32xf32>
    %87 = arith.addf %85, %86 : vector<1x32xf32>
    %88 = arith.negf %87 : vector<1x32xf32>
    %89 = math.exp %88 : vector<1x32xf32>
    %cst_37 = arith.constant 1.000000e+00 : f32
    %90 = vector.broadcast %cst_37 : f32 to vector<1x32xf32>
    %91 = arith.addf %90, %89 : vector<1x32xf32>
    %92 = arith.divf %90, %91 : vector<1x32xf32>
    %c0_38 = arith.constant 0 : index
    %c0_39 = arith.constant 0 : index
    %93 = vector.load %arg11[%c0_38, %c0_39] : memref<32x512xf32, #tpu.memory_space<vmem>>, vector<32x512xf32>
    %cst_40 = arith.constant dense<0.000000e+00> : vector<1x512xf32>
    %94 = tpu.matmul %92, %93, %cst_40 {dimension_numbers = #tpu.dot_dimension_numbers<[1], [0], [0], [1], [0, 0, 1, 1], [], []>} : vector<1x32xf32>, vector<32x512xf32>, vector<1x512xf32> -> vector<1x512xf32>
    %95 = vector.broadcast %94 : vector<1x512xf32> to vector<16x512xf32>
    %96 = arith.mulf %71, %95 : vector<16x512xf32>
    %c0_41 = arith.constant 0 : index
    %c0_42 = arith.constant 0 : index
    %97 = vector.load %arg12[%c0_41, %c0_42] : memref<512x128xf32, #tpu.memory_space<vmem>>, vector<512x128xf32>
    %cst_43 = arith.constant dense<0.000000e+00> : vector<16x128xf32>
    %98 = tpu.matmul %96, %97, %cst_43 {dimension_numbers = #tpu.dot_dimension_numbers<[1], [0], [0], [1], [0, 0, 1, 1], [], []>} : vector<16x512xf32>, vector<512x128xf32>, vector<16x128xf32> -> vector<16x128xf32>
    %c0_44 = arith.constant 0 : index
    %c0_45 = arith.constant 0 : index
    %99 = vector.load %arg13[%c0_44, %c0_45] : memref<1x128xf32, #tpu.memory_space<vmem>>, vector<1x128xf32>
    %100 = vector.broadcast %99 : vector<1x128xf32> to vector<16x128xf32>
    %101 = arith.addf %98, %100 : vector<16x128xf32>
    %102 = arith.addf %101, %1 : vector<16x128xf32>
    %103 = vector.shape_cast %102 : vector<16x128xf32> to vector<1x16x128xf32>
    %c0_46 = arith.constant 0 : index
    %c0_47 = arith.constant 0 : index
    %c0_48 = arith.constant 0 : index
    %104 = vector.load %arg14[%c0_46, %c0_47, %c0_48] : memref<1x16x128xf32, #tpu.memory_space<vmem>>, vector<1x16x128xf32>
    tpu.vector_store %arg14[%c0_46, %c0_47, %c0_48], %103 {strides = array<i32>} : memref<1x16x128xf32, #tpu.memory_space<vmem>>, vector<1x16x128xf32>,
    return
  }
  func.func @transform_0(%arg0: i32) -> (i32, i32, i32) {
    %c0_i32 = arith.constant 0 : i32
    %c0_i32_0 = arith.constant 0 : i32
    %c0_i32_1 = arith.constant 0 : i32
    return %arg0, %c0_i32, %c0_i32_0 : i32, i32, i32
  }
  func.func @transform_1(%arg0: i32) -> (i32, i32) {
    %c0_i32 = arith.constant 0 : i32
    %c0_i32_0 = arith.constant 0 : i32
    %c0_i32_1 = arith.constant 0 : i32
    return %c0_i32, %c0_i32_0 : i32, i32
  }
  func.func @transform_2(%arg0: i32) -> (i32, i32) {
    %c0_i32 = arith.constant 0 : i32
    %c0_i32_0 = arith.constant 0 : i32
    %c0_i32_1 = arith.constant 0 : i32
    return %c0_i32, %c0_i32_0 : i32, i32
  }
  func.func @transform_3(%arg0: i32) -> (i32, i32) {
    %c0_i32 = arith.constant 0 : i32
    %c0_i32_0 = arith.constant 0 : i32
    %c0_i32_1 = arith.constant 0 : i32
    return %c0_i32, %c0_i32_0 : i32, i32
  }
  func.func @transform_4(%arg0: i32) -> (i32, i32) {
    %c0_i32 = arith.constant 0 : i32
    %c0_i32_0 = arith.constant 0 : i32
    %c0_i32_1 = arith.constant 0 : i32
    return %c0_i32, %c0_i32_0 : i32, i32
  }
  func.func @transform_5(%arg0: i32) -> (i32, i32) {
    %c0_i32 = arith.constant 0 : i32
    %c0_i32_0 = arith.constant 0 : i32
    %c0_i32_1 = arith.constant 0 : i32
    return %c0_i32, %c0_i32_0 : i32, i32
  }
  func.func @transform_6(%arg0: i32) -> (i32, i32) {
    %c0_i32 = arith.constant 0 : i32
    %c0_i32_0 = arith.constant 0 : i32
    %c0_i32_1 = arith.constant 0 : i32
    return %c0_i32, %c0_i32_0 : i32, i32
  }
  func.func @transform_7(%arg0: i32) -> (i32, i32) {
    %c0_i32 = arith.constant 0 : i32
    %c0_i32_0 = arith.constant 0 : i32
    %c0_i32_1 = arith.constant 0 : i32
    return %c0_i32, %c0_i32_0 : i32, i32
  }
  func.func @transform_8(%arg0: i32) -> (i32, i32) {
    %c0_i32 = arith.constant 0 : i32
    %c0_i32_0 = arith.constant 0 : i32
    %c0_i32_1 = arith.constant 0 : i32
    return %c0_i32, %c0_i32_0 : i32, i32
  }
  func.func @transform_9(%arg0: i32) -> (i32, i32) {
    %c0_i32 = arith.constant 0 : i32
    %c0_i32_0 = arith.constant 0 : i32
    %c0_i32_1 = arith.constant 0 : i32
    return %c0_i32, %c0_i32_0 : i32, i32
  }
  func.func @transform_10(%arg0: i32) -> (i32, i32) {
    %c0_i32 = arith.constant 0 : i32
    %c0_i32_0 = arith.constant 0 : i32
    %c0_i32_1 = arith.constant 0 : i32
    return %c0_i32, %c0_i32_0 : i32, i32
  }
  func.func @transform_11(%arg0: i32) -> (i32, i32) {
    %c0_i32 = arith.constant 0 : i32
    %c0_i32_0 = arith.constant 0 : i32
    %c0_i32_1 = arith.constant 0 : i32
    return %c0_i32, %c0_i32_0 : i32, i32
  }
  func.func @transform_12(%arg0: i32) -> (i32, i32) {
    %c0_i32 = arith.constant 0 : i32
    %c0_i32_0 = arith.constant 0 : i32
    %c0_i32_1 = arith.constant 0 : i32
    return %c0_i32, %c0_i32_0 : i32, i32
  }
  func.func @transform_13(%arg0: i32) -> (i32, i32, i32) {
    %c0_i32 = arith.constant 0 : i32
    %c0_i32_0 = arith.constant 0 : i32
    %c0_i32_1 = arith.constant 0 : i32
    return %arg0, %c0_i32, %c0_i32_0 : i32, i32, i32
  }
}

</mosaic_0001>

<bundles_post_ra>
// kernel: _mbconv_forward.1
= control target key start
LH: loop header
LB: loop body
LE: loop exit
PB: predicated region body
PF: predicated region fallthrough
CT: control target
= control target key end

     0   :  { %s1751_s25 = smov 0   ;;  %s3205_s0 = inlined_call_operand.vmem [shape: f32[2,16,128], index: 0, kind: input, shape index: {}]   ;;  %s3206_s1 = inlined_call_operand.vmem [shape: f32[128,512], index: 1, kind: input, shape index: {}]   ;;  %s3207_s2 = inlined_call_operand.vmem [shape: f32[1,512], index: 2, kind: input, shape index: {}]   ;;  %s3208_s3 = inlined_call_operand.vmem [shape: f32[9,512], index: 3, kind: input, shape index: {}]   ;;  %s3209_s4 = inlined_call_operand.vmem [shape: f32[1,512], index: 4, kind: input, shape index: {}]   ;;  %s3210_s5 = inlined_call_operand.vmem [shape: f32[512,32], index: 5, kind: input, shape index: {}]   ;;  %s3211_s6 = inlined_call_operand.vmem [shape: f32[32,8], index: 6, kind: input, shape index: {}]   ;;  %s3212_s7 = inlined_call_operand.vmem [shape: f32[1,8], index: 7, kind: input, shape index: {}]   ;;  %s3213_s8 = inlined_call_operand.vmem [shape: f32[8,32], index: 8, kind: input, shape index: {}]   ;;  %s3214_s9 = inlined_call_operand.vmem [shape: f32[1,32], index: 9, kind: input, shape index: {}]   ;;  %s3215_s10 = inlined_call_operand.vmem [shape: f32[32,512], index: 10, kind: input, shape index: {}]   ;;  %s3216_s11 = inlined_call_operand.vmem [shape: f32[512,128], index: 11, kind: input, shape index: {}]   ;;  %s3217_s12 = inlined_call_operand.vmem [shape: f32[1,128], index: 12, kind: input, shape index: {}]   ;;  %s3218_s13 = inlined_call_operand.vmem [shape: f32[2,16,128], index: 13, kind: output, shape index: {}]  }
   0x1 LB: > { %s1630_s26 = sadd.s32 4294967295, %s1677_s25   ;;  %p1634_p0 = scmp.ge.s32.totalorder %s1677_s25, 1  ;;  %s1677_s25 = sphi %s1751_s25, %s23_s25  }
   0x2   : > { %p387_p1 = scmp.lt.s32.totalorder %s1677_s25, 3 }
   0x4   : > { %p388_p2 = pnand %p1634_p0, %p387_p1 }
   0x6   : > { %391 = sbr.rel (%p388_p2) target bundleno = 1152 (0x480), region = 72 }
   0xb   : > { %v503_v0 = vld [vmem:[%s3206_s1 + $0x1e0] sm:$0xff]  ;;  %v504_v1 = vld [vmem:[%s3206_s1 + $0x1e8] sm:$0xff]  ;;  %v505_v2 = vld [vmem:[%s3206_s1 + $0x1f0] sm:$0xff]  ;;  %p1872_p3 = scmp.lt.s32.totalorder %s1630_s26, 1  ;;  %s1679_s29 = smov 32   ;;  %vm1230_vm6 = vcmask 261120  }
   0xc   : > { %517 = vmatpush.msra.mxu0 %v503_v0  ;;  %540 = vmatpush.msra.mxu1 %v504_v1  ;;  %v499_v3 = vld [vmem:[%s3206_s1 + $0x1c0] sm:$0xff]  ;;  %v500_v4 = vld [vmem:[%s3206_s1 + $0x1c8] sm:$0xff]  ;;  %v501_v5 = vld [vmem:[%s3206_s1 + $0x1d0] sm:$0xff]  ;;  %s1680_s15 = smov 96   ;;  %vm1257_vm7 = vcmask 64512  }
   0xd   : > { %563 = vmatpush.msra.mxu2 %v505_v2  ;;  %v506_v6 = vld [vmem:[%s3206_s1 + $0x1f8] sm:$0xff]  ;;  %v495_v7 = vld [vmem:[%s3206_s1 + $0x1a0] sm:$0xff]  ;;  %v496_v8 = vld [vmem:[%s3206_s1 + $0x1a8] sm:$0xff]  ;;  %s3274_s26 = smov (!%p1872_p3, %s1630_s26), 1 }
   0xe   : > { %518 = vmatpush.msra.mxu0 %v499_v3  ;;  %541 = vmatpush.msra.mxu1 %v500_v4  ;;  %v497_v9 = vld [vmem:[%s3206_s1 + $0x1b0] sm:$0xff]  ;;  %v502_v10 = vld [vmem:[%s3206_s1 + $0x1d8] sm:$0xff]  ;;  %v491_v11 = vld [vmem:[%s3206_s1 + $0x180] sm:$0xff]  ;;  %s1648_s30 = sshll.u32 %s3274_s26, 4 }
   0xf   : > { %564 = vmatpush.msra.mxu2 %v501_v5  ;;  %586 = vmatpush.msra.mxu3 %v506_v6  ;;  %v492_v12 = vld [vmem:[%s3206_s1 + $0x188] sm:$0xff]  ;;  %v493_v13 = vld [vmem:[%s3206_s1 + $0x190] sm:$0xff]  ;;  %v498_v14 = vld [vmem:[%s3206_s1 + $0x1b8] sm:$0xff]  ;;  %s1954_s14 = scalar_lea.vmem %s3205_s0, %s1648_s30 }
  0x10   : > { %519 = vmatpush.msra.mxu0 %v495_v7  ;;  %542 = vmatpush.msra.mxu1 %v496_v8  ;;  %v487_v15 = vld [vmem:[%s3206_s1 + $0x160] sm:$0xff]  ;;  %v488_v16 = vld [vmem:[%s3206_s1 + $0x168] sm:$0xff]  ;;  %v489_v17 = vld [vmem:[%s3206_s1 + $0x170] sm:$0xff] }
  0x11   : > { %565 = vmatpush.msra.mxu2 %v497_v9  ;;  %587 = vmatpush.msra.mxu3 %v502_v10  ;;  %v494_v18 = vld [vmem:[%s3206_s1 + $0x198] sm:$0xff]  ;;  %v483_v19 = vld [vmem:[%s3206_s1 + $0x140] sm:$0xff]  ;;  %v484_v20 = vld [vmem:[%s3206_s1 + $0x148] sm:$0xff] }
  0x12   : > { %520 = vmatpush.msra.mxu0 %v491_v11  ;;  %543 = vmatpush.msra.mxu1 %v492_v12  ;;  %v485_v21 = vld [vmem:[%s3206_s1 + $0x150] sm:$0xff]  ;;  %v490_v22 = vld [vmem:[%s3206_s1 + $0x178] sm:$0xff]  ;;  %v479_v23 = vld [vmem:[%s3206_s1 + $0x120] sm:$0xff] }
  0x13   : > { %566 = vmatpush.msra.mxu2 %v493_v13  ;;  %588 = vmatpush.msra.mxu3 %v498_v14  ;;  %v480_v24 = vld [vmem:[%s3206_s1 + $0x128] sm:$0xff]  ;;  %v481_v25 = vld [vmem:[%s3206_s1 + $0x130] sm:$0xff]  ;;  %v486_v26 = vld [vmem:[%s3206_s1 + $0x158] sm:$0xff] }
  0x14   : > { %521 = vmatpush.msra.mxu0 %v487_v15  ;;  %544 = vmatpush.msra.mxu1 %v488_v16  ;;  %v475_v27 = vld [vmem:[%s3206_s1 + $0x100] sm:$0xff]  ;;  %v476_v28 = vld [vmem:[%s3206_s1 + $0x108] sm:$0xff]  ;;  %v477_v29 = vld [vmem:[%s3206_s1 + $0x110] sm:$0xff] }
  0x15   : > { %567 = vmatpush.msra.mxu2 %v489_v17  ;;  %589 = vmatpush.msra.mxu3 %v494_v18  ;;  %v482_v30 = vld [vmem:[%s3206_s1 + $0x138] sm:$0xff]  ;;  %v471_v31 = vld [vmem:[%s3206_s1 + $0xe0] sm:$0xff]  ;;  %v472_v32 = vld [vmem:[%s3206_s1 + $0xe8] sm:$0xff] }
  0x16   : > { %522 = vmatpush.msra.mxu0 %v483_v19  ;;  %545 = vmatpush.msra.mxu1 %v484_v20  ;;  %v473_v33 = vld [vmem:[%s3206_s1 + $0xf0] sm:$0xff]  ;;  %v478_v34 = vld [vmem:[%s3206_s1 + $0x118] sm:$0xff]  ;;  %v467_v35 = vld [vmem:[%s3206_s1 + $0xc0] sm:$0xff] }
  0x17   : > { %568 = vmatpush.msra.mxu2 %v485_v21  ;;  %590 = vmatpush.msra.mxu3 %v490_v22  ;;  %v468_v36 = vld [vmem:[%s3206_s1 + $0xc8] sm:$0xff]  ;;  %v469_v37 = vld [vmem:[%s3206_s1 + $0xd0] sm:$0xff]  ;;  %v474_v38 = vld [vmem:[%s3206_s1 + $0xf8] sm:$0xff] }
  0x18   : > { %523 = vmatpush.msra.mxu0 %v479_v23  ;;  %546 = vmatpush.msra.mxu1 %v480_v24  ;;  %v463_v39 = vld [vmem:[%s3206_s1 + $0xa0] sm:$0xff]  ;;  %v464_v40 = vld [vmem:[%s3206_s1 + $0xa8] sm:$0xff]  ;;  %v465_v41 = vld [vmem:[%s3206_s1 + $0xb0] sm:$0xff] }
  0x19   : > { %569 = vmatpush.msra.mxu2 %v481_v25  ;;  %591 = vmatpush.msra.mxu3 %v486_v26  ;;  %v470_v42 = vld [vmem:[%s3206_s1 + $0xd8] sm:$0xff]  ;;  %v459_v43 = vld [vmem:[%s3206_s1 + $0x80] sm:$0xff]  ;;  %v460_v44 = vld [vmem:[%s3206_s1 + $0x88] sm:$0xff] }
  0x1a   : > { %524 = vmatpush.msra.mxu0 %v475_v27  ;;  %547 = vmatpush.msra.mxu1 %v476_v28  ;;  %v461_v45 = vld [vmem:[%s3206_s1 + $0x90] sm:$0xff]  ;;  %v466_v46 = vld [vmem:[%s3206_s1 + $0xb8] sm:$0xff]  ;;  %v455_v47 = vld [vmem:[%s3206_s1 + $0x60] sm:$0xff]  ;;  %v633_v28 = vlaneseq }
  0x1b   : > { %570 = vmatpush.msra.mxu2 %v477_v29  ;;  %592 = vmatpush.msra.mxu3 %v482_v30  ;;  %v456_v48 = vld [vmem:[%s3206_s1 + $0x68] sm:$0xff]  ;;  %v457_v49 = vld [vmem:[%s3206_s1 + $0x70] sm:$0xff]  ;;  %v462_v50 = vld [vmem:[%s3206_s1 + $0x98] sm:$0xff] }
  0x1c   : > { %525 = vmatpush.msra.mxu0 %v471_v31  ;;  %548 = vmatpush.msra.mxu1 %v472_v32  ;;  %v451_v51 = vld [vmem:[%s3206_s1 + $0x40] sm:$0xff]  ;;  %v452_v52 = vld [vmem:[%s3206_s1 + $0x48] sm:$0xff]  ;;  %v453_v53 = vld [vmem:[%s3206_s1 + $0x50] sm:$0xff] }
  0x1d   : > { %571 = vmatpush.msra.mxu2 %v473_v33  ;;  %593 = vmatpush.msra.mxu3 %v478_v34  ;;  %v458_v54 = vld [vmem:[%s3206_s1 + $0x78] sm:$0xff]  ;;  %v447_v55 = vld [vmem:[%s3206_s1 + $0x20] sm:$0xff]  ;;  %v448_v56 = vld [vmem:[%s3206_s1 + $0x28] sm:$0xff] }
  0x1e   : > { %526 = vmatpush.msra.mxu0 %v467_v35  ;;  %549 = vmatpush.msra.mxu1 %v468_v36  ;;  %v449_v57 = vld [vmem:[%s3206_s1 + $0x30] sm:$0xff]  ;;  %v454_v58 = vld [vmem:[%s3206_s1 + $0x58] sm:$0xff]  ;;  %v443_v59 = vld [vmem:[%s3206_s1] sm:$0xff]  ;;  %v1999_v35 = vshrl.u32 %v633_v28, 7 }
  0x1f   : > { %572 = vmatpush.msra.mxu2 %v469_v37  ;;  %594 = vmatpush.msra.mxu3 %v474_v38  ;;  %v444_v60 = vld [vmem:[%s3206_s1 + $0x8] sm:$0xff]  ;;  %v445_v61 = vld [vmem:[%s3206_s1 + $0x10] sm:$0xff]  ;;  %v450_v62 = vld [vmem:[%s3206_s1 + $0x38] sm:$0xff] }
  0x20   : > { %527 = vmatpush.msra.mxu0 %v463_v39  ;;  %550 = vmatpush.msra.mxu1 %v464_v40  ;;  %v441_v63 = vld [vmem:[%s1954_s14] sm:$0xff]  ;;  %v446_v0 = vld [vmem:[%s3206_s1 + $0x18] sm:$0xff]  ;;  %v442_v1 = vld [vmem:[%s1954_s14 + $0x8] sm:$0xff]  ;;  %vm673_vm0 = vcmp.lt.s32.totalorder %v1999_v35, 7  ;;  %vm646_vm1 = vcmp.lt.s32.totalorder %v1999_v35, 1  ;;  %vm636_vm2 = vcmp.ne.s32.totalorder %v1999_v35, 0 }
  0x21   : > { %573 = vmatpush.msra.mxu2 %v465_v41  ;;  %595 = vmatpush.msra.mxu3 %v470_v42  ;;  %v507_v2 = vld [vmem:[%s3207_s2] sm:$0xf] }
  0x22   : > { %528 = vmatpush.msra.mxu0 %v459_v43  ;;  %551 = vmatpush.msra.mxu1 %v460_v44  ;;  %v509_v3 = vperm.slane %v507_v2, 0  ;;  %v510_v4 = vperm.slane %v507_v2, 1  ;;  %v511_v11 = vperm.slane %v507_v2, 2  ;;  %v512_v14 = vperm.slane %v507_v2, 3 }
  0x23   : > { %574 = vmatpush.msra.mxu2 %v461_v45  ;;  %596 = vmatpush.msra.mxu3 %v466_v46 }
  0x24   : > { %529 = vmatpush.msra.mxu0 %v455_v47  ;;  %552 = vmatpush.msra.mxu1 %v456_v48 }
  0x25   : > { %575 = vmatpush.msra.mxu2 %v457_v49  ;;  %597 = vmatpush.msra.mxu3 %v462_v50 }
  0x26   : > { %530 = vmatpush.msra.mxu0 %v451_v51  ;;  %553 = vmatpush.msra.mxu1 %v452_v52 }
  0x27   : > { %576 = vmatpush.msra.mxu2 %v453_v53  ;;  %598 = vmatpush.msra.mxu3 %v458_v54 }
  0x28   : > { %531 = vmatpush.msra.mxu0 %v447_v55  ;;  %554 = vmatpush.msra.mxu1 %v448_v56 }
  0x29   : > { %577 = vmatpush.msra.mxu2 %v449_v57  ;;  %599 = vmatpush.msra.mxu3 %v454_v58 }
  0x2a   : > { %532 = vmatpush.msra.mxu0 %v443_v59  ;;  %555 = vmatpush.msra.mxu1 %v444_v60 }
  0x2b   : > { %578 = vmatpush.msra.mxu2 %v445_v61  ;;  %600 = vmatpush.msra.mxu3 %v450_v62 }
  0x2c   : > { %533 = vmatmul.f32.vlgmr.msra.gmra.mxu0 %v441_v63  ;;  %556 = vmatmul.f32.vlgmr.msra.gmra.mxu1 %v441_v63 }
  0x2d   : > { %579 = vmatmul.f32.vlgmr.msra.gmra.mxu2 %v441_v63  ;;  %601 = vmatpush.msra.mxu3 %v446_v0  ;;  %v635_v0 = vadd.s32 8, %v1999_v35 }
  0x2e   : > { %602 = vmatmul.f32.vlgmr.msra.gmra.mxu3 %v441_v63 }
  0x2f   : > { %vm664_vm3 = vcmp.ne.s32.totalorder %v635_v0, 15 }
  0x34   : > { %536 = vmatmul.f32.gmra.mxu0 %v442_v1  ;;  %559 = vmatmul.f32.gmra.mxu1 %v442_v1 }
  0x35   : > { %582 = vmatmul.f32.gmra.mxu2 %v442_v1 }
  0x36   : > { %605 = vmatmul.f32.gmra.mxu3 %v442_v1 }
  0xa9   : > { %v534_v5 = vpop.f32.mrf.mxu0  ;;  %v557_v6 = vpop.f32.mrf.mxu1 }
  0xaa   : > { %v535_v7 = vadd.f32 %v534_v5, %v509_v3  ;;  %v558_v8 = vadd.f32 %v557_v6, %v510_v4 }
  0xac   : > { %v609_v9 = vmax.f32 %v535_v7, 0.0  ;;  %v610_v10 = vmax.f32 %v558_v8, 0.0 }
  0xae   : > { %v1976_v12 = vmin.f32 %v609_v9, 6.0  ;;  %v1978_v13 = vmin.f32 %v610_v10, 6.0 }
  0xb0   : > { %3232 = vst [vmem:[#allocation2_spill] sm:$0xff] %v1978_v13  ;;  %v580_v15 = vpop.f32.mrf.mxu2  ;;  %806 = vrot.lane.b32.xlu2 %v1978_v13, %s1679_s29  ;;  %802 = vrot.lane.b32.xlu1 %v1976_v12, %s1679_s29  ;;  %v639_v48 = vrot.slane %v1978_v13, 7  ;;  %v638_v55 = vrot.slane %v1976_v12, 7  ;;  %v666_v57 = vrot.slane %v1978_v13, 1  ;;  %v665_v2 = vrot.slane %v1976_v12, 1 }
  0xb1   : > { %v581_v16 = vadd.f32 %v580_v15, %v511_v11  ;;  %v560_v17 = vpop.f32.mrf.mxu1  ;;  %v603_v18 = vpop.f32.mrf.mxu3 }
  0xb2   : > { %v604_v20 = vadd.f32 %v603_v18, %v512_v14  ;;  %v561_v22 = vadd.f32 %v560_v17, %v510_v4  ;;  %v537_v31 = vpop.f32.mrf.mxu0 }
  0xb3   : > { %v611_v19 = vmax.f32 %v581_v16, 0.0  ;;  %v538_v37 = vadd.f32 %v537_v31, %v509_v3 }
  0xb4   : > { %v612_v23 = vmax.f32 %v604_v20, 0.0  ;;  %v614_v26 = vmax.f32 %v561_v22, 0.0 }
  0xb5   : > { %v1984_v21 = vmin.f32 %v611_v19, 6.0  ;;  %v613_v46 = vmax.f32 %v538_v37, 0.0 }
  0xb6   : > { %v1986_v24 = vmin.f32 %v612_v23, 6.0  ;;  %v1994_v33 = vmin.f32 %v614_v26, 6.0  ;;  %v2188_v23 = vand.u32 127, %v633_v28 }
  0xb7   : > { %3233 = vst [vmem:[#allocation3_spill] sm:$0xff] %v1984_v21  ;;  %834 = vrot.lane.b32.xlu0 %v1984_v21, %s1680_s15  ;;  %v667_v41 = vrot.slane %v1984_v21, 1  ;;  %v2043_v53 = vmin.f32 %v613_v46, 6.0  ;;  %v640_v9 = vrot.slane %v1984_v21, 7 }
  0xb8   : > { %v583_v25 = vpop.f32.mrf.mxu2  ;;  %826 = vrot.lane.b32.xlu1 %v1976_v12, %s1680_s15  ;;  %814 = vrot.lane.b32.xlu2 %v1986_v24, %s1679_s29  ;;  %v641_v39 = vrot.slane %v1986_v24, 7  ;;  %v668_v42 = vrot.slane %v1986_v24, 1  ;;  %v643_v43 = vrot.slane %v1994_v33, 7  ;;  %v670_v54 = vrot.slane %v1994_v33, 1 }
  0xb9   : > { %v584_v27 = vadd.f32 %v583_v25, %v511_v11  ;;  %v606_v29 = vpop.f32.mrf.mxu3  ;;  %v642_v56 = vrot.slane %v2043_v53, 7  ;;  %v669_v3 = vrot.slane %v2043_v53, 1  ;;  %vm708_vm4 = vcmp.lt.s32.totalorder %v2188_v23, 32 }
  0xba   : > { %v607_v32 = vadd.f32 %v606_v29, %v512_v14  ;;  %v2037_v51 = vsel %vm646_vm1, %v639_v48, %v643_v43  ;;  %v2057_v58 = vsel %vm673_vm0, %v666_v57, %v670_v54  ;;  %v652_v60 = vsel %vm646_vm1, %v643_v43, %v639_v48 }
  0xbb   : > { %v615_v30 = vmax.f32 %v584_v27, 0.0  ;;  %3235 = vst [vmem:[#allocation5_spill] sm:$0xff] %v2057_v58  ;;  %v2063_v59 = vsel %vm646_vm1, %v638_v55, %v642_v56  ;;  %v2074_v61 = vsel %vm636_vm2, %v652_v60, 0.0  ;;  %v651_v62 = vsel %vm646_vm1, %v642_v56, %v638_v55 }
  0xbc   : > { %v616_v36 = vmax.f32 %v607_v32, 0.0  ;;  %v2086_v63 = vsel %vm636_vm2, %v651_v62, 0.0  ;;  %v679_v1 = vsel %vm673_vm0, %v670_v54, %v666_v57  ;;  %v2108_v5 = vsel %vm673_vm0, %v665_v2, %v669_v3 }
  0xbd   : > { %v1996_v34 = vmin.f32 %v615_v30, 6.0  ;;  %v2102_v4 = vsel %vm664_vm3, %v679_v1, 0.0  ;;  %v678_v6 = vsel %vm673_vm0, %v669_v3, %v665_v2  ;;  %vm733_vm5 = vcmp.lt.s32.totalorder %v2188_v23, 96 }
  0xbe   : > { %v2005_v38 = vmin.f32 %v616_v36, 6.0  ;;  %v2115_v7 = vsel %vm664_vm3, %v678_v6, 0.0 }
  0xbf   : > { %808 = vrot.lane.b32.xlu0 %v1994_v33, %s1679_s29  ;;  %v671_v40 = vrot.slane %v1996_v34, 1  ;;  %3236 = vst [vmem:[#allocation6_spill] sm:$0xff] %v2115_v7  ;;  %v644_v8 = vrot.slane %v1996_v34, 7 }
  0xc0   : > { %830 = vrot.lane.b32.xlu1 %v1978_v13, %s1680_s15  ;;  %838 = vrot.lane.b32.xlu2 %v1986_v24, %s1680_s15  ;;  %v645_v44 = vrot.slane %v2005_v38, 7  ;;  %v672_v45 = vrot.slane %v2005_v38, 1 }
  0xc1   : > { %v2024_v47 = vsel %vm673_vm0, %v671_v40, %v667_v41  ;;  %v2129_v10 = vsel %vm646_vm1, %v640_v9, %v644_v8  ;;  %v2155_v14 = vsel %vm673_vm0, %v667_v41, %v671_v40  ;;  %v653_v16 = vsel %vm646_vm1, %v644_v8, %v640_v9 }
  0xc2   : > { %v2029_v49 = vsel %vm673_vm0, %v668_v42, %v672_v45  ;;  %v654_v50 = vsel %vm646_vm1, %v645_v44, %v641_v39  ;;  %v2041_v52 = vsel %vm673_vm0, %v672_v45, %v668_v42  ;;  %v2143_v11 = vsel %vm646_vm1, %v641_v39, %v645_v44  ;;  %3237 = vst [vmem:[#allocation7_spill] sm:$0xff] %v2155_v14  ;;  %v2251_v45 = vld [vmem:[%s3208_s3 + $0x8] sm:$0xff] }
  0xc3   : > { %3234 = vst [vmem:[#allocation4_spill] sm:$0xff] %v2029_v49  ;;  %v2167_v17 = vsel %vm636_vm2, %v653_v16, 0.0  ;;  %v2173_v18 = vsel %vm636_vm2, %v654_v50, 0.0  ;;  %v2181_v20 = vsel %vm664_vm3, %v2041_v52, 0.0  ;;  %v2197_v25 = vsel %vm664_vm3, %v2024_v47, 0.0 }
  0xc4   : > { %3238 = vst [vmem:[#allocation8_spill] sm:$0xff] %v2167_v17  ;;  %v763_v46 = vperm.slane %v2251_v45, 1  ;;  %v743_v48 = vperm.slane %v2251_v45, 0 }
  0xc5   : > { %3239 = vst [vmem:[#allocation9_spill] sm:$0xff] %v2181_v20 }
  0xc6   : > { %3240 = vst [vmem:[#allocation10_spill] sm:$0xff] %v2197_v25  ;;  %v771_v57 = vmul.f32 %v763_v46, %v2037_v51 }
  0xc7   : > { %696 = vrot.lane.b32.xlu0 %v2037_v51, %s1679_s29 }
  0xc8   : > { %810 = vrot.lane.b32.xlu1 %v1984_v21, %s1679_s29  ;;  %804 = vrot.lane.b32.xlu2 %v2043_v53, %s1679_s29 }
  0xcf   : > { %914 = vrot.lane.b32.xlu0 %v2057_v58, %s1679_s29 }
  0xd0   : > { %719 = vrot.lane.b32.xlu1 %v2063_v59, %s1680_s15  ;;  %828 = vrot.lane.b32.xlu2 %v2043_v53, %s1680_s15 }
  0xd7   : > { %694 = vrot.lane.b32.xlu0 %v2074_v61, %s1679_s29 }
  0xd8   : > { %723 = vrot.lane.b32.xlu1 %v2037_v51, %s1680_s15  ;;  %832 = vrot.lane.b32.xlu2 %v1994_v33, %s1680_s15 }
  0xdf   : > { %717 = vrot.lane.b32.xlu0 %v2086_v63, %s1680_s15 }
  0xe0   : > { %690 = vrot.lane.b32.xlu1 %v2086_v63, %s1679_s29  ;;  %692 = vrot.lane.b32.xlu2 %v2063_v59, %s1679_s29 }
  0xe7   : > { %721 = vrot.lane.b32.xlu0 %v2074_v61, %s1680_s15 }
  0xe8   : > { %916 = vrot.lane.b32.xlu1 %v2102_v4, %s1679_s29  ;;  %910 = vrot.lane.b32.xlu2 %v2108_v5, %s1679_s29 }
  0xef   : > { %912 = vrot.lane.b32.xlu0 %v2115_v7, %s1679_s29 }
  0xf0   : > { %836 = vrot.lane.b32.xlu1 %v1996_v34, %s1680_s15  ;;  %934 = vrot.lane.b32.xlu2 %v2108_v5, %s1680_s15 }
  0xf7   : > { %816 = vrot.lane.b32.xlu0 %v2005_v38, %s1679_s29 }
  0xf8   : > { %700 = vrot.lane.b32.xlu1 %v2129_v10, %s1679_s29  ;;  %812 = vrot.lane.b32.xlu2 %v1996_v34, %s1679_s29 }
  0xff   : > { %840 = vrot.lane.b32.xlu0 %v2005_v38, %s1680_s15 }
 0x100   : > { %727 = vrot.lane.b32.xlu1 %v2129_v10, %s1680_s15  ;;  %704 = vrot.lane.b32.xlu2 %v2143_v11, %s1679_s29 }
 0x107   : > { %731 = vrot.lane.b32.xlu0 %v2143_v11, %s1680_s15 }
 0x108   : > { %942 = vrot.lane.b32.xlu1 %v2155_v14, %s1680_s15  ;;  %918 = vrot.lane.b32.xlu2 %v2155_v14, %s1679_s29 }
 0x10a   : > { %v807_v15 = vpop.permute.xlu2 %806 }
 0x10f   : > { %922 = vrot.lane.b32.xlu0 %v2029_v49, %s1679_s29 }
 0x110   : > { %698 = vrot.lane.b32.xlu1 %v2167_v17, %s1679_s29  ;;  %702 = vrot.lane.b32.xlu2 %v2173_v18, %s1679_s29 }
 0x112   : > { %v815_v19 = vpop.permute.xlu2 %814 }
 0x117   : > { %946 = vrot.lane.b32.xlu0 %v2029_v49, %s1680_s15 }
 0x118   : > { %924 = vrot.lane.b32.xlu1 %v2181_v20, %s1679_s29  ;;  %729 = vrot.lane.b32.xlu2 %v2173_v18, %s1680_s15 }
 0x11a   : > { %v839_v22 = vpop.permute.xlu2 %838 }
 0x11f   : > { %725 = vrot.lane.b32.xlu0 %v2167_v17, %s1680_s15 }
 0x120   : > { %948 = vrot.lane.b32.xlu1 %v2181_v20, %s1680_s15  ;;  %944 = vrot.lane.b32.xlu2 %v2197_v25, %s1680_s15 }
 0x122   : > { %v803_v26 = vpop.permute.xlu1 %802  ;;  %v2201_v27 = vpop.permute.xlu2 %804 }
 0x123   : > { %v2205_v28 = vsel %vm708_vm4, %v803_v26, %v807_v15  ;;  %v2209_v29 = vsel %vm708_vm4, %v815_v19, %v803_v26  ;;  %v767_v26 = vmul.f32 %v763_v46, %v2074_v61 }
 0x124   : > { %3241 = vst [vmem:[#allocation11_spill] sm:$0xff] %v2205_v28 }
 0x127   : > { %920 = vrot.lane.b32.xlu0 %v2197_v25, %s1679_s29 }
 0x128   : > { %938 = vrot.lane.b32.xlu1 %v2057_v58, %s1680_s15  ;;  %940 = vrot.lane.b32.xlu2 %v2102_v4, %s1680_s15 }
 0x129   : > { %v835_v30 = vpop.permute.xlu0 %834 }
 0x12a   : > { %v2220_v31 = vsel %vm733_vm5, %v835_v30, %v839_v22  ;;  %v827_v32 = vpop.permute.xlu1 %826  ;;  %v2222_v35 = vpop.permute.xlu2 %828 }
 0x12b   : > { %3242 = vst [vmem:[#allocation12_spill] sm:$0xff] %v2220_v31  ;;  %v2226_v36 = vsel %vm733_vm5, %v839_v22, %v827_v32 }
 0x12c   : > { %3243 = vst [vmem:[#allocation13_spill] sm:$0xff] %v2226_v36 }
 0x12f   : > { %936 = vrot.lane.b32.xlu0 %v2115_v7, %s1680_s15  ;;  %s440_s15 = scalar_lea.vmem %s3218_s13, %s1648_s30 }
 0x131   : > { %v809_v37 = vpop.permute.xlu0 %808 }
 0x132   : > { %v2233_v39 = vsel %vm708_vm4, %v2201_v27, %v809_v37  ;;  %v831_v40 = vpop.permute.xlu1 %830  ;;  %v833_v41 = vpop.permute.xlu2 %832 }
 0x133   : > { %v2237_v42 = vsel %vm733_vm5, %v831_v40, %v835_v30  ;;  %v2241_v43 = vsel %vm733_vm5, %v827_v32, %v831_v40  ;;  %v2246_v44 = vsel %vm733_vm5, %v2222_v35, %v833_v41 }
 0x134   : > { %3244 = vst [vmem:[#allocation14_spill] sm:$0xff] %v2237_v42 }
 0x139   : > { %v697_v47 = vpop.permute.xlu0 %696 }
 0x13a   : > { %v811_v50 = vpop.permute.xlu1 %810  ;;  %v693_v55 = vpop.permute.xlu2 %692 }
 0x13b   : > { %v2257_v52 = vsel %vm708_vm4, %v811_v50, %v815_v19  ;;  %v2261_v54 = vsel %vm708_vm4, %v807_v15, %v811_v50  ;;  %v714_v56 = vsel %vm708_vm4, %v693_v55, %v697_v47  ;;  %v2305_v50 = vld [vmem:[%s3208_s3] sm:$0xff] }
 0x13c   : > { %3245 = vst [vmem:[#allocation15_spill] sm:$0xff] %v2261_v54  ;;  %v751_v60 = vmul.f32 %v743_v48, %v714_v56  ;;  %v762_v56 = vperm.slane %v2305_v50, 1  ;;  %v782_v46 = vperm.slane %v2305_v50, 2 }
 0x13e   : > { %v2266_v62 = vadd.f32 %v771_v57, %v751_v60  ;;  %v742_v60 = vperm.slane %v2305_v50, 0 }
 0x141   : > { %v915_v0 = vpop.permute.xlu0 %914 }
 0x142   : > { %v2268_v1 = vpop.permute.xlu1 %719  ;;  %v2270_v2 = vpop.permute.xlu2 %910 }
 0x143   : > { %v2275_v3 = vsel %vm708_vm4, %v2270_v2, %v915_v0 }
 0x144   : > { %3246 = vst [vmem:[#allocation16_spill] sm:$0xff] %v2275_v3 }
 0x149   : > { %v2277_v6 = vpop.permute.xlu0 %694 }
 0x14a   : > { %v2279_v8 = vpop.permute.xlu1 %723  ;;  %v2285_v9 = vpop.permute.xlu2 %934 }
 0x14b   : > { %v739_v51 = vsel %vm733_vm5, %v2268_v1, %v2279_v8  ;;  %3247 = vst [vmem:[#allocation17_spill] sm:$0xff] %v2285_v9 }
 0x14c   : > { %v790_v20 = vmul.f32 %v782_v46, %v739_v51  ;;  %v850_v51 = vperm.slane %v2305_v50, 3 }
 0x151   : > { %v2287_v15 = vpop.permute.xlu0 %717 }
 0x152   : > { %v691_v16 = vpop.permute.xlu1 %690  ;;  %v2292_v22 = vpop.permute.xlu2 %812 }
 0x153   : > { %v713_v19 = vsel %vm708_vm4, %v691_v16, %v2277_v6  ;;  %v2298_v32 = vsel %vm708_vm4, %v809_v37, %v2292_v22 }
 0x154   : > { %v747_v30 = vmul.f32 %v743_v48, %v713_v19 }
 0x156   : > { %v2300_v40 = vadd.f32 %v767_v26, %v747_v30  ;;  %v770_v26 = vmul.f32 %v762_v56, %v2063_v59  ;;  %v2340_v59 = vld [vmem:[%s3208_s3 + $0x10] sm:$0xff] }
 0x157   : > { %v3251_v28 = vperm.slane %v2340_v59, 0 }
 0x158   : > { %3248 = vst [vmem:[#allocation18_spill] sm:$0xff] %v2300_v40 }
 0x159   : > { %v2308_v57 = vpop.permute.xlu0 %721 }
 0x15a   : > { %3249 = vst [vmem:[#allocation19_spill] sm:$0xff] %v2308_v57  ;;  %v738_v61 = vsel %vm733_vm5, %v2287_v15, %v2308_v57  ;;  %v2315_v37 = vpop.permute.xlu1 %916  ;;  %v705_v48 = vpop.permute.xlu2 %704  ;;  %v766_v57 = vmul.f32 %v762_v56, %v2086_v63 }
 0x15b   : > { %v716_v19 = vsel %vm708_vm4, %v705_v48, %v693_v55  ;;  %v786_v49 = vmul.f32 %v782_v46, %v738_v61 }
 0x15c   : > { %v750_v30 = vmul.f32 %v742_v60, %v716_v19 }
 0x15e   : > { %v778_v3 = vadd.f32 %v770_v26, %v750_v30  ;;  %v870_v30 = vperm.slane %v2305_v50, 4 }
 0x160   : > { %v798_v31 = vadd.f32 %v790_v20, %v778_v3  ;;  %v3230_v20 = vperm.slane %v2340_v59, 1  ;;  %v874_v63 = vmul.f32 %v870_v30, %v1976_v12 }
 0x161   : > { %v2321_v42 = vpop.permute.xlu0 %912 }
 0x162   : > { %v2323_v25 = vpop.permute.xlu1 %836  ;;  %v2330_v7 = vpop.permute.xlu2 %918  ;;  %v772_v3 = vmul.f32 %v3230_v20, %v2129_v10  ;;  %v783_v20 = vperm.slane %v2251_v45, 2 }
 0x163   : > { %v2328_v14 = vsel %vm733_vm5, %v833_v41, %v2323_v25  ;;  %v2335_v55 = vsel %vm708_vm4, %v915_v0, %v2330_v7  ;;  %v890_v0 = vperm.slane %v2305_v50, 5 }
 0x164   : > { %3250 = vst [vmem:[#allocation20_spill] sm:$0xff] %v2335_v55 }
 0x165   : > { %v898_v13 = vmul.f32 %v890_v0, %v2246_v44  ;;  %v851_v44 = vperm.slane %v2251_v45, 3  ;;  %v894_v56 = vmul.f32 %v890_v0, %v2241_v43  ;;  %v784_v43 = vperm.slane %v2340_v59, 2 }
 0x166   : > { %v959_v0 = vperm.slane %v2251_v45, 6 }
 0x167   : > { %v859_v61 = vmul.f32 %v851_v44, %v2233_v39 }
 0x169   : > { %v817_v41 = vpop.permute.xlu0 %816 }
 0x16a   : > { %v825_v19 = vsel %vm708_vm4, %v817_v41, %v2201_v27  ;;  %v701_v26 = vpop.permute.xlu1 %700  ;;  %v2352_v54 = vpop.permute.xlu2 %702 }
 0x16b   : > { %v858_v55 = vmul.f32 %v850_v51, %v825_v19  ;;  %v712_v40 = vsel %vm708_vm4, %v697_v47, %v701_v26  ;;  %v715_v27 = vsel %vm708_vm4, %v2352_v54, %v691_v16  ;;  %v878_v19 = vmul.f32 %v870_v30, %v2043_v53  ;;  %v2376_v53 = vld [vmem:[%s3208_s3 + $0x18] sm:$0xff] }
 0x16c   : > { %v752_v58 = vmul.f32 %v3251_v28, %v712_v40  ;;  %v746_v17 = vmul.f32 %v742_v60, %v715_v27  ;;  %v854_v28 = vmul.f32 %v850_v51, %v2209_v29  ;;  %v979_v60 = vperm.slane %v2251_v45, 7 }
 0x16d   : > { %v866_v21 = vadd.f32 %v858_v55, %v798_v31  ;;  %v891_v55 = vperm.slane %v2251_v45, 5  ;;  %v931_v30 = vsel %vm708_vm4, %v2321_v42, %v2315_v37 }
 0x16e   : > { %v2364_v47 = vadd.f32 %v772_v3, %v752_v58  ;;  %v774_v10 = vadd.f32 %v766_v57, %v746_v17  ;;  %v745_v17 = vperm.slane %v2376_v53, 0 }
 0x16f   : > { %v886_v9 = vadd.f32 %v878_v19, %v866_v21  ;;  %v899_v27 = vmul.f32 %v891_v55, %v2328_v14 }
 0x170   : > { %v794_v40 = vadd.f32 %v786_v49, %v774_v10  ;;  %v765_v49 = vperm.slane %v2376_v53, 1  ;;  %v819_v10 = vsel %vm708_vm4, %v2292_v22, %v817_v41  ;;  %v1111_v41 = vld [vmem:[%s3210_s5 + $0xf8] sm:$0xff] }
 0x171   : > { %v2369_v36 = vpop.permute.xlu0 %840  ;;  %v2371_v16 = vadd.f32 %v898_v13, %v886_v9  ;;  %1164 = vmatpush.msrb.mxu1 %v1111_v41 }
 0x172   : > { %v2382_v21 = vsel %vm733_vm5, %v2369_v36, %v2222_v35  ;;  %v728_v58 = vpop.permute.xlu1 %727  ;;  %v862_v13 = vadd.f32 %v854_v28, %v794_v40  ;;  %v2390_v31 = vpop.permute.xlu2 %729  ;;  %v710_v35 = vsel %vm708_vm4, %v701_v26, %v705_v48  ;;  %v872_v48 = vperm.slane %v2340_v59, 4 }
 0x173   : > { %v737_v29 = vsel %vm733_vm5, %v2279_v8, %v728_v58  ;;  %v2401_v12 = vsel %vm733_vm5, %v2390_v31, %v2287_v15  ;;  %v871_v8 = vperm.slane %v2251_v45, 4  ;;  %v753_v15 = vmul.f32 %v745_v17, %v710_v35 }
 0x174   : > { %v791_v9 = vmul.f32 %v783_v20, %v737_v29  ;;  %v882_v57 = vadd.f32 %v874_v63, %v862_v13  ;;  %v773_v51 = vmul.f32 %v765_v49, %v2143_v11  ;;  %v852_v26 = vperm.slane %v2340_v59, 3 }
 0x175   : > { %v879_v39 = vmul.f32 %v871_v8, %v1994_v33  ;;  %v785_v11 = vperm.slane %v2376_v53, 2  ;;  %v853_v13 = vperm.slane %v2376_v53, 3 }
 0x176   : > { %v799_v46 = vadd.f32 %v791_v9, %v2266_v62  ;;  %v2415_v3 = vadd.f32 %v894_v56, %v882_v57  ;;  %v781_v14 = vadd.f32 %v773_v51, %v753_v15  ;;  %v967_v9 = vmul.f32 %v959_v0, %v931_v30 }
 0x177   : > { %v873_v56 = vperm.slane %v2376_v53, 4 }
 0x178   : > { %v867_v62 = vadd.f32 %v859_v61, %v799_v46  ;;  %v860_v61 = vmul.f32 %v852_v26, %v2298_v32  ;;  %v861_v46 = vmul.f32 %v853_v13, %v819_v10 }
 0x179   : > { %v732_v19 = vpop.permute.xlu0 %731  ;;  %v881_v32 = vmul.f32 %v873_v56, %v2005_v38  ;;  %v987_v38 = vmul.f32 %v979_v60, %v2102_v4 }
 0x17a   : > { %v887_v33 = vadd.f32 %v879_v39, %v867_v62  ;;  %v735_v28 = vsel %vm733_vm5, %v728_v58, %v732_v19  ;;  %v741_v40 = vsel %vm733_vm5, %v732_v19, %v2268_v1  ;;  %v2441_v63 = vpop.permute.xlu1 %942  ;;  %v2448_v22 = vpop.permute.xlu2 %944  ;;  %v1127_v1 = vld [vmem:[%s3210_s5 + $0x178] sm:$0xff]  ;;  %v978_v58 = vperm.slane %v2305_v50, 7  ;;  %v1110_v39 = vld [vmem:[%s3210_s5 + $0xf0] sm:$0xff] }
 0x17b   : > { %v792_v29 = vmul.f32 %v784_v43, %v735_v28  ;;  %v793_v35 = vmul.f32 %v785_v11, %v741_v40  ;;  %1184 = vmatpush.msrb.mxu2 %v1127_v1  ;;  %v1126_v62 = vld [vmem:[%s3210_s5 + $0x170] sm:$0xff]  ;;  %1165 = vmatpush.msrb.mxu1 %v1110_v39  ;;  %v1095_v28 = vld [vmem:[%s3210_s5 + $0x78] sm:$0xff]  ;;  %v892_v40 = vperm.slane %v2340_v59, 5 }
 0x17c   : > { %v907_v57 = vadd.f32 %v899_v27, %v887_v33  ;;  %v880_v27 = vmul.f32 %v872_v48, %v1996_v34  ;;  %v958_v33 = vperm.slane %v2305_v50, 6  ;;  %v1109_v34 = vld [vmem:[%s3210_s5 + $0xe8] sm:$0xff]  ;;  %1144 = vmatpush.msrb.mxu0 %v1095_v28  ;;  %v982_v4 = vmul.f32 %v978_v58, %v2108_v5  ;;  %v1124_v5 = vld [vmem:[%s3210_s5 + $0x160] sm:$0xff]  ;;  %v1142_v39 = vld [vmem:[%s3210_s5 + $0x1f0] sm:$0xff] }
 0x17d   : > { %v800_v15 = vadd.f32 %v792_v29, %v2364_v47  ;;  %v801_v51 = vadd.f32 %v793_v35, %v781_v14  ;;  %1185 = vmatpush.msrb.mxu2 %v1126_v62  ;;  %v843_v47 = vsel %vm733_vm5, %v2323_v25, %v2369_v36  ;;  %v2496_v25 = vld [vmem:[%s3208_s3 + $0x28] ss:$0 sm:$0xff]  ;;  %1166 = vmatpush.msrb.mxu1 %v1109_v34  ;;  %v1143_v14 = vld [vmem:[%s3210_s5 + $0x1f8] sm:$0xff]  ;;  %v893_v29 = vperm.slane %v2376_v53, 5 }
 0x17e   : > { %v975_v30 = vadd.f32 %v967_v9, %v907_v57  ;;  %v1125_v36 = vld [vmem:[%s3210_s5 + $0x168] sm:$0xff]  ;;  %1204 = vmatpush.msrb.mxu3 %v1143_v14  ;;  %v1094_v9 = vld [vmem:[%s3210_s5 + $0x70] sm:$0xff]  ;;  %v1108_v57 = vld [vmem:[%s3210_s5 + $0xe0] sm:$0xff] }
 0x17f   : > { %v868_v19 = vadd.f32 %v860_v61, %v800_v15  ;;  %v869_v10 = vadd.f32 %v861_v46, %v801_v51  ;;  %1186 = vmatpush.msrb.mxu2 %v1125_v36  ;;  %v769_v61 = vmul.f32 %v765_v49, %v2173_v18  ;;  %v900_v46 = vmul.f32 %v892_v40, %v843_v47  ;;  %v1141_v28 = vld [vmem:[%s3210_s5 + $0x1e8] sm:$0xff] }
 0x180   : > { %1145 = vmatpush.msrb.mxu0 %v1094_v9  ;;  %1167 = vmatpush.msrb.mxu1 %v1108_v57  ;;  %v901_v62 = vmul.f32 %v893_v29, %v2382_v21  ;;  %v1107_v21 = vld [vmem:[%s3210_s5 + $0xd8] sm:$0xff] }
 0x181   : > { %v2508_v35 = vpop.permute.xlu0 %922  ;;  %v888_v41 = vadd.f32 %v880_v27, %v868_v19  ;;  %v889_v1 = vadd.f32 %v881_v32, %v869_v10  ;;  %1187 = vmatpush.msrb.mxu2 %v1124_v5  ;;  %v1093_v32 = vld [vmem:[%s3210_s5 + $0x68] sm:$0xff]  ;;  %1205 = vmatpush.msrb.mxu3 %v1142_v39  ;;  %v1091_v5 = vld [vmem:[%s3210_s5 + $0x58] sm:$0xff]  ;;  %v1090_v39 = vld [vmem:[%s3210_s5 + $0x50] sm:$0xff] }
 0x182   : > { %v932_v15 = vsel %vm708_vm4, %v2508_v35, %v2270_v2  ;;  %v699_v51 = vpop.permute.xlu1 %698  ;;  %v2544_v27 = vpop.permute.xlu2 %940  ;;  %1146 = vmatpush.msrb.mxu0 %v1093_v32  ;;  %1168 = vmatpush.msrb.mxu1 %v1107_v21  ;;  %v1138_v21 = vld [vmem:[%s3210_s5 + $0x1d0] sm:$0xff] }
 0x183   : > { %v962_v18 = vmul.f32 %v958_v33, %v932_v15  ;;  %v709_v49 = vsel %vm708_vm4, %v699_v51, %v2352_v54  ;;  %v2542_v2 = vsel %vm708_vm4, %v2277_v6, %v699_v51  ;;  %v1123_v54 = vld [vmem:[%s3210_s5 + $0x158] sm:$0xff]  ;;  %v995_v6 = vadd.f32 %v987_v38, %v975_v30  ;;  %v1106_v30 = vld [vmem:[%s3210_s5 + $0xd0] sm:$0xff]  ;;  %1206 = vmatpush.msrb.mxu3 %v1141_v28 }
 0x184   : > { %v749_v47 = vmul.f32 %v745_v17, %v709_v49  ;;  %v953_v19 = vsel %vm733_vm5, %v2544_v27, %v2448_v22  ;;  %v2561_v10 = vadd.f32 %v900_v46, %v888_v41  ;;  %v2568_v14 = vadd.f32 %v901_v62, %v889_v1  ;;  %v1092_v17 = vld [vmem:[%s3210_s5 + $0x60] sm:$0xff]  ;;  %v1122_v38 = vld [vmem:[%s3210_s5 + $0x150] sm:$0xff]  ;;  %1188 = vmatpush.msrb.mxu2 %v1123_v54  ;;  %v1139_v46 = vld [vmem:[%s3210_s5 + $0x1d8] sm:$0xff] }
 0x185   : > { %v970_v34 = vadd.f32 %v962_v18, %v2415_v3  ;;  %v1007_v36 = vmul.f32 %v2496_v25, %v953_v19  ;;  %v789_v3 = vmul.f32 %v785_v11, %v2401_v12  ;;  %v1140_v1 = vld [vmem:[%s3210_s5 + $0x1e0] sm:$0xff]  ;;  %1147 = vmatpush.msrb.mxu0 %v1092_v17  ;;  %1169 = vmatpush.msrb.mxu1 %v1106_v30  ;;  %v1105_v12 = vld [vmem:[%s3210_s5 + $0xc8] sm:$0xff]  ;;  %v961_v15 = vperm.slane %v2376_v53, 6  ;;  %v2648_v19 = vld [vmem:[%s3208_s3 + $0x38] ss:$0 sm:$0xff] }
 0x186   : > { %v777_v41 = vadd.f32 %v769_v61, %v749_v47  ;;  %v1121_v11 = vld [vmem:[%s3210_s5 + $0x148] sm:$0xff]  ;;  %v857_v61 = vmul.f32 %v853_v13, %v2257_v52  ;;  %1189 = vmatpush.msrb.mxu2 %v1122_v38  ;;  %1207 = vmatpush.msrb.mxu3 %v1140_v1  ;;  %v1104_v52 = vld [vmem:[%s3210_s5 + $0xc0] sm:$0xff]  ;;  %v926_v62 = vsel %vm708_vm4, %v2330_v7, %v2508_v35  ;;  %v1103_v7 = vld [vmem:[%s3210_s5 + $0xb8] sm:$0xff]  ;;  %v981_v35 = vperm.slane %v2376_v53, 7 }
 0x187   : > { %v2585_v9 = vadd.f32 %v1007_v36, %v995_v6  ;;  %v2587_v57 = vadd.f32 %v982_v4, %v970_v34  ;;  %1148 = vmatpush.msrb.mxu0 %v1091_v5  ;;  %1170 = vmatpush.msrb.mxu1 %v1105_v12  ;;  %v1120_v13 = vld [vmem:[%s3210_s5 + $0x140] sm:$0xff]  ;;  %v877_v18 = vmul.f32 %v873_v56, %v1986_v24  ;;  %v1089_v24 = vld [vmem:[%s3210_s5 + $0x48] sm:$0xff]  ;;  %v1119_v56 = vld [vmem:[%s3210_s5 + $0x138] sm:$0xff] }
 0x188   : > { %v797_v4 = vadd.f32 %v789_v3, %v777_v41  ;;  %1190 = vmatpush.msrb.mxu2 %v1121_v11  ;;  %1208 = vmatpush.msrb.mxu3 %v1139_v46  ;;  %v3252_v47 = vld [vmem:[#allocation13_spill] sm:$0xff]  ;;  %v1137_v34 = vld [vmem:[%s3210_s5 + $0x1c8] sm:$0xff]  ;;  %v965_v36 = vmul.f32 %v961_v15, %v926_v62  ;;  %v1102_v17 = vld [vmem:[%s3210_s5 + $0xb0] sm:$0xff]  ;;  %v3254_v11 = vperm.slane %v2340_v59, 0 }
 0x189   : > { %v2605_v51 = vpop.permute.xlu0 %946  ;;  %1149 = vmatpush.msrb.mxu0 %v1090_v39  ;;  %1171 = vmatpush.msrb.mxu1 %v1104_v52  ;;  %v3253_v38 = vld [vmem:[#allocation17_spill] sm:$0xff]  ;;  %v1136_v1 = vld [vmem:[%s3210_s5 + $0x1c0] sm:$0xff]  ;;  %v1101_v12 = vld [vmem:[%s3210_s5 + $0xa8] sm:$0xff] }
 0x18a   : > { %v865_v49 = vadd.f32 %v857_v61, %v797_v4  ;;  %v2623_v32 = vpop.permute.xlu1 %924  ;;  %1191 = vmatpush.msrb.mxu2 %v1120_v13  ;;  %1209 = vmatpush.msrb.mxu3 %v1138_v21  ;;  %v956_v3 = vsel %vm733_vm5, %v2605_v51, %v3253_v38  ;;  %v1087_v5 = vld [vmem:[%s3210_s5 + $0x38] sm:$0xff]  ;;  %v748_v61 = vmul.f32 %v3254_v11, %v2542_v2  ;;  %v3255_v46 = vld [vmem:[#allocation4_spill] sm:$0xff]  ;;  %v3256_v13 = vld [vmem:[#allocation2_spill] sm:$0xff]  ;;  %v3258_v21 = vperm.slane %v2340_v59, 1 }
 0x18b   : > { %v933_v54 = vsel %vm708_vm4, %v2623_v32, %v2321_v42  ;;  %v897_v42 = vmul.f32 %v893_v29, %v3252_v47  ;;  %1150 = vmatpush.msrb.mxu0 %v1089_v24  ;;  %1172 = vmatpush.msrb.mxu1 %v1103_v7  ;;  %v1088_v29 = vld [vmem:[%s3210_s5 + $0x40] sm:$0xff]  ;;  %v1135_v4 = vld [vmem:[%s3210_s5 + $0x1b8] sm:$0xff]  ;;  %v985_v39 = vmul.f32 %v981_v35, %v3255_v46  ;;  %v1086_v2 = vld [vmem:[%s3210_s5 + $0x30] sm:$0xff] }
 0x18c   : > { %v885_v6 = vadd.f32 %v877_v18, %v865_v49  ;;  %v966_v28 = vmul.f32 %v958_v33, %v933_v54  ;;  %v1118_v33 = vld [vmem:[%s3210_s5 + $0x130] sm:$0xff]  ;;  %1192 = vmatpush.msrb.mxu2 %v1119_v56  ;;  %1210 = vmatpush.msrb.mxu3 %v1137_v34  ;;  %v2697_v62 = vmul.f32 %v871_v8, %v3256_v13  ;;  %v1100_v18 = vld [vmem:[%s3210_s5 + $0xa0] sm:$0xff]  ;;  %v3259_v7 = vld [vmem:[#allocation3_spill] sm:$0xff] }
 0x18d   : > { %1151 = vmatpush.msrb.mxu0 %v1088_v29  ;;  %1173 = vmatpush.msrb.mxu1 %v1102_v17  ;;  %v3257_v49 = vld [vmem:[#allocation8_spill] sm:$0xff]  ;;  %v1005_v24 = vmul.f32 %v2648_v19, %v956_v3  ;;  %v876_v8 = vmul.f32 %v872_v48, %v3259_v7  ;;  %v1116_v47 = vld [vmem:[%s3210_s5 + $0x120] sm:$0xff]  ;;  %v1085_v17 = vld [vmem:[%s3210_s5 + $0x28] sm:$0xff] }
 0x18e   : > { %v905_v30 = vadd.f32 %v897_v42, %v885_v6  ;;  %v2671_v41 = vadd.f32 %v966_v28, %v2371_v16  ;;  %v1117_v16 = vld [vmem:[%s3210_s5 + $0x128] sm:$0xff]  ;;  %1193 = vmatpush.msrb.mxu2 %v1118_v33  ;;  %1211 = vmatpush.msrb.mxu3 %v1136_v1  ;;  %v768_v54 = vmul.f32 %v3258_v21, %v3257_v49  ;;  %v1134_v42 = vld [vmem:[%s3210_s5 + $0x1b0] sm:$0xff]  ;;  %v980_v6 = vperm.slane %v2340_v59, 7  ;;  %v1099_v33 = vld [vmem:[%s3210_s5 + $0x98] sm:$0xff] }
 0x18f   : > { %1152 = vmatpush.msrb.mxu0 %v1087_v5  ;;  %1174 = vmatpush.msrb.mxu1 %v1101_v12  ;;  %v1115_v1 = vld [vmem:[%s3210_s5 + $0x118] sm:$0xff]  ;;  %v1133_v5 = vld [vmem:[%s3210_s5 + $0x1a8] sm:$0xff]  ;;  %v1098_v46 = vld [vmem:[%s3210_s5 + $0x90] sm:$0xff] }
 0x190   : > { %v973_v52 = vadd.f32 %v965_v36, %v905_v30  ;;  %v3260_v36 = vld [vmem:[#allocation19_spill] sm:$0xff]  ;;  %1194 = vmatpush.msrb.mxu2 %v1117_v16  ;;  %1212 = vmatpush.msrb.mxu3 %v1135_v4  ;;  %v776_v30 = vadd.f32 %v768_v54, %v748_v61  ;;  %v3261_v12 = vld [vmem:[#allocation5_spill] sm:$0xff]  ;;  %v1084_v4 = vld [vmem:[%s3210_s5 + $0x20] sm:$0xff] }
 0x191   : > { %v726_v56 = vpop.permute.xlu0 %725  ;;  %1153 = vmatpush.msrb.mxu0 %v1086_v2  ;;  %1175 = vmatpush.msrb.mxu1 %v1100_v18  ;;  %v2746_v11 = vmul.f32 %v979_v60, %v3261_v12  ;;  %v3262_v61 = vld [vmem:[#allocation11_spill] sm:$0xff]  ;;  %v1114_v18 = vld [vmem:[%s3210_s5 + $0x110] sm:$0xff]  ;;  %v1132_v49 = vld [vmem:[%s3210_s5 + $0x1a0] sm:$0xff] }
 0x192   : > { %v993_v28 = vadd.f32 %v985_v39, %v973_v52  ;;  %v734_v34 = vsel %vm733_vm5, %v726_v56, %v2390_v31  ;;  %v736_v48 = vsel %vm733_vm5, %v3260_v36, %v726_v56  ;;  %v2725_v29 = vpop.permute.xlu1 %948  ;;  %1195 = vmatpush.msrb.mxu2 %v1116_v47  ;;  %1213 = vmatpush.msrb.mxu3 %v1134_v42  ;;  %v3263_v60 = vld [vmem:[#allocation15_spill] sm:$0xff]  ;;  %v3264_v52 = vld [vmem:[#allocation18_spill] sm:$0xff]  ;;  %v1083_v47 = vld [vmem:[%s3210_s5 + $0x18] sm:$0xff] }
 0x193   : > { %v787_v31 = vmul.f32 %v783_v20, %v736_v48  ;;  %v788_v3 = vmul.f32 %v784_v43, %v734_v34  ;;  %v855_v20 = vmul.f32 %v851_v44, %v3262_v61  ;;  %v960_v43 = vperm.slane %v2340_v59, 6  ;;  %v2766_v44 = vld [vmem:[%s3209_s4] sm:$0xf]  ;;  %1154 = vmatpush.msrb.mxu0 %v1085_v17  ;;  %1176 = vmatpush.msrb.mxu1 %v1099_v33  ;;  %v3266_v54 = vld [vmem:[#allocation7_spill] sm:$0xff]  ;;  %v1131_v36 = vld [vmem:[%s3210_s5 + $0x198] sm:$0xff] }
 0x194   : > { %v2752_v16 = vadd.f32 %v1005_v24, %v993_v28  ;;  %v856_v39 = vmul.f32 %v852_v26, %v3263_v60  ;;  %v3265_v21 = vld [vmem:[#allocation6_spill] sm:$0xff]  ;;  %v2781_v24 = vmul.f32 %v980_v6, %v3266_v54  ;;  %1196 = vmatpush.msrb.mxu2 %v1115_v1  ;;  %1214 = vmatpush.msrb.mxu3 %v1133_v5  ;;  %v1097_v42 = vld [vmem:[%s3210_s5 + $0x88] sm:$0xff]  ;;  %v3268_v28 = vld [vmem:[#allocation12_spill] sm:$0xff] }
 0x195   : > { %v795_v13 = vadd.f32 %v787_v31, %v3264_v52  ;;  %v796_v2 = vadd.f32 %v788_v3, %v776_v30  ;;  %v2778_v26 = vmul.f32 %v978_v58, %v3265_v21  ;;  %v3267_v7 = vld [vmem:[#allocation10_spill] sm:$0xff]  ;;  %v896_v50 = vmul.f32 %v892_v40, %v3268_v28  ;;  %1155 = vmatpush.msrb.mxu0 %v1084_v4  ;;  %v3270_v33 = vld [vmem:[#allocation16_spill] sm:$0xff] }
 0x196   : > { %v2784_v56 = vmul.f32 %v980_v6, %v3267_v7  ;;  %1177 = vmatpush.msrb.mxu1 %v1098_v46  ;;  %v1113_v6 = vld [vmem:[%s3210_s5 + $0x108] sm:$0xff]  ;;  %v3269_v48 = vld [vmem:[#allocation14_spill] sm:$0xff]  ;;  %v963_v59 = vmul.f32 %v959_v0, %v3270_v33  ;;  %v3271_v40 = vld [vmem:[#allocation20_spill] sm:$0xff]  ;;  %v1021_v31 = vperm.slane %v2766_v44, 1  ;;  %1197 = vmatpush.msrb.mxu2 %v1114_v18  ;;  %v950_v1 = vsel %vm733_vm5, %v2441_v63, %v2605_v51 }
 0x197   : > { %v863_v58 = vadd.f32 %v855_v20, %v795_v13  ;;  %v864_v34 = vadd.f32 %v856_v39, %v796_v2  ;;  %v895_v17 = vmul.f32 %v891_v55, %v3269_v48  ;;  %v964_v30 = vmul.f32 %v960_v43, %v3271_v40  ;;  %1215 = vmatpush.msrb.mxu3 %v1132_v49  ;;  %v1082_v3 = vld [vmem:[%s3210_s5 + $0x10] sm:$0xff]  ;;  %v1096_v0 = vld [vmem:[%s3210_s5 + $0x80] sm:$0xff] }
 0x198   : > { %1156 = vmatpush.msrb.mxu0 %v1083_v47  ;;  %1178 = vmatpush.msrb.mxu1 %v1097_v42  ;;  %v1112_v12 = vld [vmem:[%s3210_s5 + $0x100] sm:$0xff]  ;;  %v1661_v61 = vld [vmem:[%s3208_s3 + $0x30] ss:$0 sm:$0xff]  ;;  %v1023_v51 = vperm.slane %v2766_v44, 3  ;;  %v1033_v13 = vadd.f32 %v1021_v31, %v2585_v9  ;;  %v1022_v2 = vperm.slane %v2766_v44, 2 }
 0x199   : > { %v883_v55 = vadd.f32 %v2697_v62, %v863_v58  ;;  %v884_v5 = vadd.f32 %v876_v8, %v864_v34  ;;  %v921_v45 = vpop.permute.xlu0 %920  ;;  %v951_v62 = vsel %vm733_vm5, %v2448_v22, %v2725_v29  ;;  %v1663_v4 = vld [vmem:[%s3208_s3 + $0x20] ss:$0 sm:$0xff]  ;;  %1198 = vmatpush.msrb.mxu2 %v1113_v6  ;;  %1216 = vmatpush.msrb.mxu3 %v1131_v36  ;;  %v1130_v60 = vld [vmem:[%s3210_s5 + $0x190] sm:$0xff]  ;;  %v3272_v34 = vld [vmem:[#allocation9_spill] sm:$0xff] }
 0x19a   : > { %v927_v8 = vsel %vm708_vm4, %v921_v45, %v2623_v32  ;;  %v929_v20 = vsel %vm708_vm4, %v2315_v37, %v921_v45  ;;  %v939_v46 = vpop.permute.xlu1 %938  ;;  %1157 = vmatpush.msrb.mxu0 %v1082_v3  ;;  %v1081_v37 = vld [vmem:[%s3210_s5 + $0x8] sm:$0xff]  ;;  %1179 = vmatpush.msrb.mxu1 %v1096_v0  ;;  %v1004_v7 = vmul.f32 %v1661_v61, %v950_v1  ;;  %v1128_v28 = vld [vmem:[%s3210_s5 + $0x180] sm:$0xff]  ;;  %v1041_v36 = vmax.f32 %v1033_v13, 0.0 }
 0x19b   : > { %v904_v22 = vadd.f32 %v896_v50, %v884_v5  ;;  %v968_v39 = vmul.f32 %v960_v43, %v929_v20  ;;  %v969_v32 = vmul.f32 %v961_v15, %v927_v8  ;;  %v903_v52 = vadd.f32 %v895_v17, %v883_v55  ;;  %1199 = vmatpush.msrb.mxu2 %v1112_v12  ;;  %v1129_v43 = vld [vmem:[%s3210_s5 + $0x188] sm:$0xff] }
 0x19c   : > { %v952_v18 = vsel %vm733_vm5, %v939_v46, %v2441_v63  ;;  %v954_v15 = vsel %vm733_vm5, %v3253_v38, %v939_v46  ;;  %1217 = vmatpush.msrb.mxu3 %v1130_v60  ;;  %v1080_v63 = vld [vmem:[%s3210_s5] sm:$0xff]  ;;  %v1008_v47 = vmul.f32 %v1661_v61, %v951_v62  ;;  %v1020_v38 = vperm.slane %v2766_v44, 0  ;;  %1158 = vmatpush.msrb.mxu0 %v1081_v37 }
 0x19d   : > { %v972_v49 = vadd.f32 %v964_v30, %v904_v22  ;;  %v976_v21 = vadd.f32 %v968_v39, %v2561_v10  ;;  %v977_v9 = vadd.f32 %v969_v32, %v2568_v14  ;;  %v971_v54 = vadd.f32 %v963_v59, %v903_v52 }
 0x19e   : > { %v1002_v42 = vmul.f32 %v1663_v4, %v954_v15  ;;  %v1003_v58 = vmul.f32 %v2496_v25, %v952_v18  ;;  %1218 = vmatpush.msrb.mxu3 %v1129_v43  ;;  %v989_v6 = vmul.f32 %v981_v35, %v3272_v34  ;;  %v994_v17 = vadd.f32 %v2778_v26, %v2671_v41 }
 0x19f   : > { %v992_v10 = vadd.f32 %v2781_v24, %v972_v49  ;;  %v996_v14 = vadd.f32 %v2784_v56, %v976_v21  ;;  %v991_v50 = vadd.f32 %v2746_v11, %v971_v54  ;;  %1159 = vmatpush.msrb.mxu0 %v1080_v63  ;;  %v1031_v24 = vadd.f32 %v1023_v51, %v2752_v16 }
 0x1a0   : > { %v1010_v48 = vadd.f32 %v1002_v42, %v2587_v57  ;;  %1219 = vmatpush.msrb.mxu3 %v1128_v28  ;;  %v997_v35 = vadd.f32 %v989_v6, %v977_v9  ;;  %v2892_v45 = vmin.f32 %v1041_v36, 6.0  ;;  %v1228_v36 = vld [vmem:[%s3211_s6 + $0x18] sm:$0xff] }
 0x1a1   : > { %v1016_v56 = vadd.f32 %v1008_v47, %v996_v14  ;;  %v1011_v11 = vadd.f32 %v1003_v58, %v991_v50  ;;  %v937_v33 = vpop.permute.xlu0 %936  ;;  %v1012_v25 = vadd.f32 %v1004_v7, %v992_v10  ;;  %1246 = vmatpush.msra.mxu0 %v1228_v36  ;;  %v1469_v36 = vld [vmem:[%s3216_s11 + $0x1d0] sm:$0xff] }
 0x1a2   : > { %v1028_v59 = vadd.f32 %v1020_v38, %v1010_v48  ;;  %v955_v53 = vsel %vm733_vm5, %v937_v33, %v2544_v27  ;;  %v957_v57 = vsel %vm733_vm5, %v2725_v29, %v937_v33  ;;  %v1039_v27 = vmax.f32 %v1031_v24, 0.0  ;;  %v1227_v48 = vld [vmem:[%s3211_s6 + $0x10] sm:$0xff]  ;;  %v1225_v24 = vld [vmem:[%s3211_s6] sm:$0xff] }
 0x1a3   : > { %v1034_v41 = vadd.f32 %v1022_v2, %v1016_v56  ;;  %v1029_v26 = vadd.f32 %v1021_v31, %v1011_v11  ;;  %v1006_v16 = vmul.f32 %v1663_v4, %v955_v53  ;;  %v1009_v40 = vmul.f32 %v2648_v19, %v957_v57  ;;  %1247 = vmatpush.msra.mxu0 %v1227_v48  ;;  %v1255_v56 = vld [vmem:[%s3213_s8] sm:$0xff]  ;;  %v1422_v48 = vld [vmem:[%s3216_s11 + $0x58] sm:$0xff] }
 0x1a4   : > { %v1030_v30 = vadd.f32 %v1022_v2, %v1012_v25  ;;  %v1036_v0 = vmax.f32 %v1028_v59, 0.0  ;;  %v2904_v4 = vmin.f32 %v1039_v27, 6.0  ;;  %1276 = vmatpush.msra.mxu1 %v1255_v56  ;;  %v1308_v27 = vld [vmem:[%s3215_s10 + $0x40] sm:$0xff]  ;;  %v1468_v56 = vld [vmem:[%s3216_s11 + $0x1c8] sm:$0xff] }
 0x1a5   : > { %v1042_v3 = vmax.f32 %v1034_v41, 0.0  ;;  %v1037_v1 = vmax.f32 %v1029_v26, 0.0  ;;  %v1014_v55 = vadd.f32 %v1006_v16, %v994_v17  ;;  %v1017_v5 = vadd.f32 %v1009_v40, %v997_v35  ;;  %v1226_v17 = vld [vmem:[%s3211_s6 + $0x8] sm:$0xff]  ;;  %v1229_v26 = vld [vmem:[%s3212_s7] sm:$0x1] }
 0x1a6   : > { %v1038_v12 = vmax.f32 %v1030_v30, 0.0  ;;  %v2908_v60 = vmin.f32 %v1036_v0, 6.0  ;;  %1248 = vmatpush.msra.mxu0 %v1226_v17  ;;  %v1309_v0 = vld [vmem:[%s3215_s10 + $0x48] sm:$0xff]  ;;  %v1438_v17 = vld [vmem:[%s3216_s11 + $0xd8] sm:$0xff] }
 0x1a7   : > { %v2894_v23 = vmin.f32 %v1042_v3, 6.0  ;;  %v2896_v29 = vmin.f32 %v1037_v1, 6.0  ;;  %v1032_v61 = vadd.f32 %v1020_v38, %v1014_v55  ;;  %v1035_v31 = vadd.f32 %v1023_v51, %v1017_v5  ;;  %v1312_v3 = vld [vmem:[%s3215_s10 + $0x60] sm:$0xff]  ;;  %v1313_v1 = vld [vmem:[%s3215_s10 + $0x68] sm:$0xff]  ;;  %v1314_v55 = vld [vmem:[%s3215_s10 + $0x70] sm:$0xff] }
 0x1a8   : > { %v2900_v62 = vmin.f32 %v1038_v12, 6.0  ;;  %1249 = vmatpush.msra.mxu0 %v1225_v24  ;;  %1331 = vmatpush.msra.mxu2 %v1312_v3  ;;  %v1315_v5 = vld [vmem:[%s3215_s10 + $0x78] sm:$0xff]  ;;  %v1310_v12 = vld [vmem:[%s3215_s10 + $0x50] sm:$0xff]  ;;  %v1452_v24 = vld [vmem:[%s3216_s11 + $0x148] sm:$0xff] }
 0x1a9   : > { %v1059_v19 = vadd.f32 %v2892_v45, %v2896_v29  ;;  %v1040_v8 = vmax.f32 %v1032_v61, 0.0  ;;  %v1043_v20 = vmax.f32 %v1035_v31, 0.0  ;;  %1351 = vmatpush.msra.mxu3 %v1313_v1  ;;  %v1311_v61 = vld [vmem:[%s3215_s10 + $0x58] sm:$0xff]  ;;  %v1304_v31 = vld [vmem:[%s3215_s10 + $0x20] sm:$0xff]  ;;  %v1449_v3 = vld [vmem:[%s3216_s11 + $0x130] sm:$0xff] }
 0x1aa   : > { %v1066_v46 = vadd.f32 %v2894_v23, %v2900_v62  ;;  %1332 = vmatpush.msra.mxu2 %v1308_v27  ;;  %v1465_v1 = vld [vmem:[%s3216_s11 + $0x1b0] sm:$0xff]  ;;  %v1448_v27 = vld [vmem:[%s3216_s11 + $0x128] sm:$0xff] }
 0x1ab   : > { %v2910_v22 = vmin.f32 %v1040_v8, 6.0  ;;  %v2912_v39 = vmin.f32 %v1043_v20, 6.0  ;;  %v1060_v44 = vrot.slane %v1059_v19, 4  ;;  %1352 = vmatpush.msra.mxu3 %v1309_v0  ;;  %v1306_v8 = vld [vmem:[%s3215_s10 + $0x30] sm:$0xff]  ;;  %v1307_v20 = vld [vmem:[%s3215_s10 + $0x38] sm:$0xff]  ;;  %v1464_v0 = vld [vmem:[%s3216_s11 + $0x1a8] sm:$0xff] }
 0x1ac   : > { %v1067_v51 = vrot.slane %v1066_v46, 4  ;;  %1333 = vmatpush.msra.mxu2 %v1304_v31 }
 0x1ad   : > { %v1052_v32 = vadd.f32 %v2910_v22, %v2908_v60  ;;  %v1073_v52 = vadd.f32 %v2912_v39, %v2904_v4  ;;  %v1061_v37 = vadd.f32 %v1060_v44, %v1059_v19  ;;  %v1305_v19 = vld [vmem:[%s3215_s10 + $0x28] sm:$0xff] }
 0x1ae   : > { %v1068_v13 = vadd.f32 %v1067_v51, %v1066_v46  ;;  %v1300_v46 = vld [vmem:[%s3215_s10] sm:$0xff]  ;;  %v1301_v44 = vld [vmem:[%s3215_s10 + $0x8] sm:$0xff]  ;;  %1353 = vmatpush.msra.mxu3 %v1305_v19  ;;  %v1302_v51 = vld [vmem:[%s3215_s10 + $0x10] sm:$0xff] }
 0x1af   : > { %v1062_v2 = vrot.slane %v1061_v37, 2  ;;  %v1053_v18 = vrot.slane %v1052_v32, 4  ;;  %v1074_v15 = vrot.slane %v1073_v52, 4  ;;  %1334 = vmatpush.msra.mxu2 %v1300_v46  ;;  %v1447_v19 = vld [vmem:[%s3216_s11 + $0x120] sm:$0xff]  ;;  %v1446_v46 = vld [vmem:[%s3216_s11 + $0x118] sm:$0xff] }
 0x1b0   : > { %v1069_v43 = vrot.slane %v1068_v13, 2  ;;  %1354 = vmatpush.msra.mxu3 %v1301_v44  ;;  %v1462_v44 = vld [vmem:[%s3216_s11 + $0x198] sm:$0xff] }
 0x1b1   : > { %v1063_v49 = vadd.f32 %v1062_v2, %v1061_v37  ;;  %v1054_v21 = vadd.f32 %v1053_v18, %v1052_v32  ;;  %v1075_v9 = vadd.f32 %v1074_v15, %v1073_v52  ;;  %v1303_v32 = vld [vmem:[%s3215_s10 + $0x18] sm:$0xff]  ;;  %v1256_v52 = vld [vmem:[%s3214_s9] sm:$0x1]  ;;  %v1457_v18 = vld [vmem:[%s3216_s11 + $0x170] sm:$0xff] }
 0x1b2   : > { %v1070_v54 = vadd.f32 %v1069_v43, %v1068_v13  ;;  %v1458_v13 = vld [vmem:[%s3216_s11 + $0x178] sm:$0xff]  ;;  %v1473_v43 = vld [vmem:[%s3216_s11 + $0x1f0] sm:$0xff] }
 0x1b3   : > { %v1064_v63 = vrot.slane %v1063_v49, 1  ;;  %v1055_v7 = vrot.slane %v1054_v21, 2  ;;  %v1076_v47 = vrot.slane %v1075_v9, 2  ;;  %v1474_v2 = vld [vmem:[%s3216_s11 + $0x1f8] sm:$0xff] }
 0x1b4   : > { %v1071_v38 = vrot.slane %v1070_v54, 1 }
 0x1b5   : > { %v1065_v42 = vadd.f32 %v1064_v63, %v1063_v49  ;;  %v1056_v28 = vadd.f32 %v1055_v7, %v1054_v21  ;;  %v1077_v10 = vadd.f32 %v1076_v47, %v1075_v9  ;;  %v1456_v49 = vld [vmem:[%s3216_s11 + $0x168] sm:$0xff]  ;;  %v1426_v9 = vld [vmem:[%s3216_s11 + $0x78] sm:$0xff]  ;;  %v1425_v7 = vld [vmem:[%s3216_s11 + $0x70] sm:$0xff] }
 0x1b6   : > { %v1072_v14 = vadd.f32 %v1071_v38, %v1070_v54  ;;  %v1472_v21 = vld [vmem:[%s3216_s11 + $0x1e8] sm:$0xff]  ;;  %v1442_v54 = vld [vmem:[%s3216_s11 + $0xf8] sm:$0xff]  ;;  %v1441_v47 = vld [vmem:[%s3216_s11 + $0xf0] sm:$0xff] }
 0x1b7   : > { %1180 = vmatmul.f32.vlgmr.msrb.gmra.mxu1 %v1065_v42  ;;  %v1057_v50 = vrot.slane %v1056_v28, 1  ;;  %v1078_v58 = vrot.slane %v1077_v10, 1  ;;  %v1455_v38 = vld [vmem:[%s3216_s11 + $0x160] sm:$0xff] }
 0x1b8   : > { %1200 = vmatmul.f32.vlgmr.msrb.gmra.mxu2 %v1072_v14  ;;  %1391 = vmatpush.msrb.mxu1 %v1315_v5  ;;  %v1471_v42 = vld [vmem:[%s3216_s11 + $0x1e0] sm:$0xff]  ;;  %v1454_v14 = vld [vmem:[%s3216_s11 + $0x158] sm:$0xff] }
 0x1b9   : > { %v1058_v34 = vadd.f32 %v1057_v50, %v1056_v28  ;;  %v1079_v6 = vadd.f32 %v1078_v58, %v1077_v10  ;;  %1479 = vmatpush.msrb.mxu2 %v1426_v9  ;;  %v1424_v28 = vld [vmem:[%s3216_s11 + $0x68] sm:$0xff]  ;;  %v1470_v50 = vld [vmem:[%s3216_s11 + $0x1d8] sm:$0xff]  ;;  %v1423_v58 = vld [vmem:[%s3216_s11 + $0x60] sm:$0xff] }
 0x1ba   : > { %1392 = vmatpush.msrb.mxu1 %v1311_v61  ;;  %v1440_v10 = vld [vmem:[%s3216_s11 + $0xe8] sm:$0xff]  ;;  %v1434_v5 = vld [vmem:[%s3216_s11 + $0xb8] sm:$0xff]  ;;  %v1433_v61 = vld [vmem:[%s3216_s11 + $0xb0] sm:$0xff] }
 0x1bb   : > { %1160 = vmatmul.f32.vlgmr.msrb.gmra.mxu0 %v1058_v34  ;;  %1220 = vmatmul.f32.vlgmr.msrb.gmra.mxu3 %v1079_v6  ;;  %v1439_v34 = vld [vmem:[%s3216_s11 + $0xe0] sm:$0xff]  ;;  %v1453_v6 = vld [vmem:[%s3216_s11 + $0x150] sm:$0xff] }
 0x1bc   : > { %1371 = vmatpush.msrb.mxu0 %v1314_v55  ;;  %1393 = vmatpush.msrb.mxu1 %v1307_v20  ;;  %v1418_v55 = vld [vmem:[%s3216_s11 + $0x38] sm:$0xff]  ;;  %v1461_v9 = vld [vmem:[%s3216_s11 + $0x190] sm:$0xff] }
 0x1bd   : > { %1502 = vmatpush.msrb.mxu3 %v1442_v54  ;;  %1480 = vmatpush.msrb.mxu2 %v1425_v7  ;;  %v1415_v54 = vld [vmem:[%s3216_s11 + $0x20] sm:$0xff]  ;;  %v1444_v7 = vld [vmem:[%s3216_s11 + $0x108] sm:$0xff] }
 0x1be   : > { %1372 = vmatpush.msrb.mxu0 %v1310_v12  ;;  %1394 = vmatpush.msrb.mxu1 %v1303_v32  ;;  %v1417_v12 = vld [vmem:[%s3216_s11 + $0x30] sm:$0xff] }
 0x1bf   : > { %1503 = vmatpush.msrb.mxu3 %v1441_v47  ;;  %1481 = vmatpush.msrb.mxu2 %v1424_v28  ;;  %v1460_v47 = vld [vmem:[%s3216_s11 + $0x188] sm:$0xff]  ;;  %v1443_v28 = vld [vmem:[%s3216_s11 + $0x100] sm:$0xff] }
 0x1c0   : > { %1373 = vmatpush.msrb.mxu0 %v1306_v8  ;;  %v1463_v8 = vld [vmem:[%s3216_s11 + $0x1a0] sm:$0xff] }
 0x1c1   : > { %1504 = vmatpush.msrb.mxu3 %v1440_v10  ;;  %1482 = vmatpush.msrb.mxu2 %v1423_v58  ;;  %v1459_v10 = vld [vmem:[%s3216_s11 + $0x180] sm:$0xff]  ;;  %v1412_v58 = vld [vmem:[%s3216_s11 + $0x8] sm:$0xff] }
 0x1c2   : > { %1374 = vmatpush.msrb.mxu0 %v1302_v51 }
 0x1c3   : > { %1505 = vmatpush.msrb.mxu3 %v1439_v34  ;;  %1483 = vmatpush.msrb.mxu2 %v1422_v48  ;;  %v1428_v34 = vld [vmem:[%s3216_s11 + $0x88] sm:$0xff] }
 0x1c5   : > { %1506 = vmatpush.msrb.mxu3 %v1438_v17 }
 0x234   : > { %v1181_v11 = vpop.f32.mrf.mxu1 }
 0x238   : > { %v1161_v33 = vpop.f32.mrf.mxu0 }
 0x239   : > { %v1182_v25 = vadd.f32 %v1181_v11, %v1161_v33  ;;  %v1421_v33 = vld [vmem:[%s3216_s11 + $0x50] sm:$0xff] }
 0x23a   : > { %1484 = vmatpush.msrb.mxu2 %v1421_v33 }
 0x23b   : > { %v1201_v59 = vpop.f32.mrf.mxu2 }
 0x23c   : > { %v1202_v53 = vadd.f32 %v1201_v59, %v1182_v25  ;;  %v1437_v25 = vld [vmem:[%s3216_s11 + $0xd0] sm:$0xff] }
 0x23d   : > { %1507 = vmatpush.msrb.mxu3 %v1437_v25 }
 0x23e   : > { %v1221_v57 = vpop.f32.mrf.mxu3 }
 0x23f   : > { %v1222_v35 = vadd.f32 %v1221_v57, %v1202_v53  ;;  %v1451_v53 = vld [vmem:[%s3216_s11 + $0x140] sm:$0xff] }
 0x240   : > { %v1467_v57 = vld [vmem:[%s3216_s11 + $0x1c0] sm:$0xff] }
 0x241   : > { %v1224_v41 = vmul.f32 0.00390625, %v1222_v35  ;;  %v1420_v35 = vld [vmem:[%s3216_s11 + $0x48] sm:$0xff] }
 0x242   : > { %1485 = vmatpush.msrb.mxu2 %v1420_v35 }
 0x243   : > { %1639 = vmatmul.msk.f32.vlgmr.msra.gmra.mxu0 %vm1230_vm6, %v1224_v41  ;;  %v1436_v41 = vld [vmem:[%s3216_s11 + $0xc8] sm:$0xff] }
 0x244   : > { %1525 = vmatpush.msra.mxu0 %v1458_v13  ;;  %1508 = vmatpush.msrb.mxu3 %v1436_v41 }
 0x246   : > { %1526 = vmatpush.msra.mxu0 %v1457_v18 }
 0x248   : > { %1527 = vmatpush.msra.mxu0 %v1456_v49  ;;  %v1432_v49 = vld [vmem:[%s3216_s11 + $0xa8] sm:$0xff] }
 0x24a   : > { %1528 = vmatpush.msra.mxu0 %v1455_v38  ;;  %v1414_v38 = vld [vmem:[%s3216_s11 + $0x18] sm:$0xff] }
 0x24c   : > { %1529 = vmatpush.msra.mxu0 %v1454_v14  ;;  %v1413_v14 = vld [vmem:[%s3216_s11 + $0x10] sm:$0xff] }
 0x24e   : > { %1530 = vmatpush.msra.mxu0 %v1453_v6  ;;  %v1411_v6 = vld [vmem:[%s3216_s11] sm:$0xff] }
 0x250   : > { %1531 = vmatpush.msra.mxu0 %v1452_v24 }
 0x252   : > { %1532 = vmatpush.msra.mxu0 %v1451_v53 }
 0x2c0   : > { %v1251_v16 = vpop.f32.mrf.mxu0 }
 0x2c1   : > { %v1252_v40 = vadd.f32 %v1251_v16, %v1229_v26  ;;  %v1450_v26 = vld [vmem:[%s3216_s11 + $0x138] sm:$0xff] }
 0x2c2   : > { %v1466_v16 = vld [vmem:[%s3216_s11 + $0x1b8] sm:$0xff]  ;;  %1533 = vmatpush.msra.mxu0 %v1450_v26 }
 0x2c3   : > { %v1254_v30 = vmax.f32 %v1252_v40, 0.0  ;;  %v1419_v40 = vld [vmem:[%s3216_s11 + $0x40] sm:$0xff] }
 0x2c4   : > { %1486 = vmatpush.msrb.mxu2 %v1419_v40  ;;  %1534 = vmatpush.msra.mxu0 %v1449_v3 }
 0x2c5   : > { %1640 = vmatmul.msk.f32.vlgmr.msra.gmra.mxu1 %vm1257_vm7, %v1254_v30  ;;  %v1435_v30 = vld [vmem:[%s3216_s11 + $0xc0] sm:$0xff] }
 0x2c6   : > { %1548 = vmatpush.msra.mxu1 %v1474_v2  ;;  %1509 = vmatpush.msrb.mxu3 %v1435_v30 }
 0x2c7   : > { %1487 = vmatpush.msrb.mxu2 %v1418_v55  ;;  %1535 = vmatpush.msra.mxu0 %v1448_v27 }
 0x2c8   : > { %1549 = vmatpush.msra.mxu1 %v1473_v43  ;;  %1510 = vmatpush.msrb.mxu3 %v1434_v5  ;;  %v1416_v43 = vld [vmem:[%s3216_s11 + $0x28] sm:$0xff] }
 0x2c9   : > { %1488 = vmatpush.msrb.mxu2 %v1417_v12  ;;  %1536 = vmatpush.msra.mxu0 %v1447_v19 }
 0x2ca   : > { %1550 = vmatpush.msra.mxu1 %v1472_v21  ;;  %1511 = vmatpush.msrb.mxu3 %v1433_v61  ;;  %v1445_v21 = vld [vmem:[%s3216_s11 + $0x110] sm:$0xff] }
 0x2cb   : > { %1537 = vmatpush.msra.mxu0 %v1446_v46  ;;  %1489 = vmatpush.msrb.mxu2 %v1416_v43 }
 0x2cc   : > { %1551 = vmatpush.msra.mxu1 %v1471_v42  ;;  %1512 = vmatpush.msrb.mxu3 %v1432_v49  ;;  %v1430_v42 = vld [vmem:[%s3216_s11 + $0x98] sm:$0xff] }
 0x2cd   : > { %1538 = vmatpush.msra.mxu0 %v1445_v21  ;;  %1490 = vmatpush.msrb.mxu2 %v1415_v54 }
 0x2ce   : > { %1552 = vmatpush.msra.mxu1 %v1470_v50  ;;  %v1429_v50 = vld [vmem:[%s3216_s11 + $0x90] sm:$0xff] }
 0x2cf   : > { %1539 = vmatpush.msra.mxu0 %v1444_v7  ;;  %1491 = vmatpush.msrb.mxu2 %v1414_v38 }
 0x2d0   : > { %1553 = vmatpush.msra.mxu1 %v1469_v36  ;;  %v1427_v36 = vld [vmem:[%s3216_s11 + $0x80] sm:$0xff] }
 0x2d1   : > { %1540 = vmatpush.msra.mxu0 %v1443_v28  ;;  %1492 = vmatpush.msrb.mxu2 %v1413_v14 }
 0x2d2   : > { %1554 = vmatpush.msra.mxu1 %v1468_v56 }
 0x2d3   : > { %1493 = vmatpush.msrb.mxu2 %v1412_v58 }
 0x2d4   : > { %1555 = vmatpush.msra.mxu1 %v1467_v57 }
 0x2d5   : > { %1494 = vmatpush.msrb.mxu2 %v1411_v6 }
 0x2d6   : > { %1556 = vmatpush.msra.mxu1 %v1466_v16 }
 0x2d8   : > { %1557 = vmatpush.msra.mxu1 %v1465_v1 }
 0x2da   : > { %1558 = vmatpush.msra.mxu1 %v1464_v0 }
 0x2dc   : > { %1559 = vmatpush.msra.mxu1 %v1463_v8 }
 0x2de   : > { %1560 = vmatpush.msra.mxu1 %v1462_v44 }
 0x2e0   : > { %1561 = vmatpush.msra.mxu1 %v1461_v9 }
 0x2e2   : > { %1562 = vmatpush.msra.mxu1 %v1460_v47 }
 0x2e4   : > { %1563 = vmatpush.msra.mxu1 %v1459_v10 }
 0x342   : > { %v1278_v37 = vpop.f32.mrf.mxu1 }
 0x343   : > { %v1279_v15 = vadd.f32 %v1278_v37, %v1256_v52 }
 0x345   : > { %v1641_v63 = vmul.f32 -1.442695, %v1279_v15 }
 0x347   : > { %1665 = vpow2.f32 %v1641_v63  ;;  %v1431_v63 = vld [vmem:[%s3216_s11 + $0xa0] sm:$0xff] }
 0x348   : > { %1513 = vmatpush.msrb.mxu3 %v1431_v63 }
 0x34a   : > { %1514 = vmatpush.msrb.mxu3 %v1430_v42 }
 0x34c   : > { %1515 = vmatpush.msrb.mxu3 %v1429_v50 }
 0x34d   : > { %v1666_v11 = vpop.eup %1665 }
 0x34e   : > { %v1284_v59 = vadd.f32 1.0, %v1666_v11  ;;  %1516 = vmatpush.msrb.mxu3 %v1428_v34 }
 0x350   : > { %1667 = vrcp.f32 %v1284_v59  ;;  %v1296_v32 = vand.u32 2147483648, %v1284_v59  ;;  %v1294_v37 = vand.u32 2147483647, %v1284_v59  ;;  %vm1290_vm9 = vweird.f32 %v1284_v59  ;;  %1517 = vmatpush.msrb.mxu3 %v1427_v36 }
 0x352   : > { %v1297_v2 = vor.u32 1.1754944e-38, %v1296_v32  ;;  %vm1295_vm11 = vcmp.eq.f32.partialorder %v1294_v37, 8.507059e+37 }
 0x356   : > { %v1668_v31 = vpop.eup %1667 }
 0x357   : > { %v1286_v20 = vmul.f32 %v1668_v31, %v1284_v59  ;;  %vm1291_vm8 = vweird.f32 %v1668_v31 }
 0x358   : > { %vm1292_vm10 = vmor %vm1290_vm9, %vm1291_vm8 }
 0x359   : > { %v1287_v51 = vsub.f32 1.0, %v1286_v20  ;;  %v1670_v20 = vld [vmem:[%s1954_s14 + $0x8] sm:$0xff] }
 0x35b   : > { %v1288_v52 = vmul.f32 %v1668_v31, %v1287_v51 }
 0x35d   : > { %v1289_v13 = vadd.f32 %v1668_v31, %v1288_v52 }
 0x35f   : > { %v1293_v18 = vsel %vm1292_vm10, %v1668_v31, %v1289_v13 }
 0x360   : > { %v1298_v15 = vsel %vm1295_vm11, %v1297_v2, %v1293_v18 }
 0x361   : > { %1642 = vmatmul.msk.f32.vlgmr.msra.gmra.mxu2 %vm1230_vm6, %v1298_v15  ;;  %1643 = vmatmul.msk.f32.vlgmr.msra.gmra.mxu3 %vm1230_vm6, %v1298_v15 }
 0x362   : > { %1644 = vmatmul.msk.f32.vlgmr.msrb.gmra.mxu0 %vm1230_vm6, %v1298_v15  ;;  %1645 = vmatmul.msk.f32.vlgmr.msrb.gmra.mxu1 %vm1230_vm6, %v1298_v15 }
 0x3df   : > { %v1376_v48 = vpop.f32.mrf.mxu0  ;;  %v1396_v17 = vpop.f32.mrf.mxu1 }
 0x3e0   : > { %v1401_v24 = vperm.slane %v1376_v48, 0  ;;  %v1402_v56 = vperm.slane %v1396_v17, 0 }
 0x3e2   : > { %v1405_v11 = vmul.f32 %v1401_v24, %v2900_v62  ;;  %v1406_v33 = vmul.f32 %v1402_v56, %v2904_v4  ;;  %v1409_v26 = vmul.f32 %v1401_v24, %v2894_v23  ;;  %v1410_v16 = vmul.f32 %v1402_v56, %v2912_v39 }
 0x3e4   : > { %1541 = vmatmul.f32.vlgmr.msra.gmra.mxu0 %v1405_v11  ;;  %1564 = vmatmul.f32.vlgmr.msra.gmra.mxu1 %v1406_v33  ;;  %v1336_v25 = vpop.f32.mrf.mxu2  ;;  %v1356_v59 = vpop.f32.mrf.mxu3 }
 0x3e5   : > { %v1399_v53 = vperm.slane %v1336_v25, 0  ;;  %v1400_v57 = vperm.slane %v1356_v59, 0 }
 0x3e7   : > { %v1403_v35 = vmul.f32 %v1399_v53, %v2908_v60  ;;  %v1404_v41 = vmul.f32 %v1400_v57, %v2896_v29  ;;  %v1407_v62 = vmul.f32 %v1399_v53, %v2910_v22  ;;  %v1408_v4 = vmul.f32 %v1400_v57, %v2892_v45  ;;  %v1664_v29 = vld [vmem:[%s3217_s12] ss:$0 sm:$0xff] }
 0x3e8   : > { %v1669_v22 = vld [vmem:[%s1954_s14] sm:$0xff] }
 0x3e9   : > { %1495 = vmatmul.f32.vlgmr.msrb.gmra.mxu2 %v1403_v35  ;;  %1518 = vmatmul.f32.vlgmr.msrb.gmra.mxu3 %v1404_v41 }
 0x3ec   : > { %1544 = vmatmul.f32.gmra.mxu0 %v1409_v26  ;;  %1567 = vmatmul.f32.gmra.mxu1 %v1410_v16 }
 0x3f1   : > { %1498 = vmatmul.f32.gmra.mxu2 %v1407_v62  ;;  %1521 = vmatmul.f32.gmra.mxu3 %v1408_v4 }
 0x461   : > { %v1542_v23 = vpop.f32.mrf.mxu0  ;;  %v1565_v39 = vpop.f32.mrf.mxu1 }
 0x469   : > { %v1545_v61 = vpop.f32.mrf.mxu0  ;;  %v1568_v19 = vpop.f32.mrf.mxu1 }
 0x46c   : > { %v1496_v60 = vpop.f32.mrf.mxu2  ;;  %v1519_v40 = vpop.f32.mrf.mxu3 }
 0x46d   : > { %v1497_v30 = vadd.f32 %v1664_v29, %v1496_v60 }
 0x46f   : > { %v1520_v3 = vadd.f32 %v1519_v40, %v1497_v30 }
 0x471   : > { %v1543_v1 = vadd.f32 %v1542_v23, %v1520_v3 }
 0x473   : > { %v1566_v55 = vadd.f32 %v1565_v39, %v1543_v1 }
 0x474   : > { %v1499_v45 = vpop.f32.mrf.mxu2  ;;  %v1522_v0 = vpop.f32.mrf.mxu3 }
 0x475   : > { %v1571_v5 = vadd.f32 %v1669_v22, %v1566_v55  ;;  %v1500_v27 = vadd.f32 %v1664_v29, %v1499_v45 }
 0x477   : > { %1573 = vst [vmem:[%s440_s15] sm:$0xff] %v1571_v5  ;;  %v1523_v12 = vadd.f32 %v1522_v0, %v1500_v27 }
 0x479   : > { %v1546_v31 = vadd.f32 %v1545_v61, %v1523_v12 }
 0x47b   : > { %v1569_v8 = vadd.f32 %v1568_v19, %v1546_v31 }
 0x47d   : > { %v1572_v46 = vadd.f32 %v1670_v20, %v1569_v8 }
 0x47f   : > { %1574 = vst [vmem:[%s440_s15 + $0x8] sm:$0xff] %v1572_v46 }
 0x480 PF: > { %s23_s25 = sadd.s32 1, %s1677_s25  }
 0x481   : > { %p20_p4 = scmp.ge.s32.totalorder %s23_s25, 4  }
 0x483   :  { %22 = sbr.rel (!%p20_p4) target bundleno = 1 (0x1), region = 102 }

</bundles_post_ra>
